<compile_context>
chip_gen: v7x
topology: tpu7x:2x2x1
jax: 0.10.0
libtpu: 0.0.40
codegen_flags: <defaults>
</compile_context>

<pallas_src>
import jax
import jax.numpy as jnp
from jax.experimental import pallas as pl
from jax.experimental.pallas import tpu as pltpu

D_PAD = 128  # lane-dense padded feature / hidden / class dimension


def _ceil_to(v, m):
    return ((v + m - 1) // m) * m


def _pad2(a, rows, cols):
    out = jnp.zeros((rows, cols), a.dtype)
    return out.at[: a.shape[0], : a.shape[1]].set(a)


def _make_kernel(num_layers, tm, n_tiles, num_classes):
    final_parity = (num_layers - 1) % 2  # which ping-pong buffer holds the last layer

    def kernel(a_ref, x0_ref, w1s_ref, w2s_ref, bn_ref, p_ref,
               fc1w_ref, fc2w_ref, hb_ref, o_ref, buf_a, buf_b):
        l = pl.program_id(0)   # layer index (outer, sequential)
        i = pl.program_id(1)   # node-row tile index (inner)

        # Load the initial node features into the ping buffer once.
        @pl.when(jnp.logical_and(l == 0, i == 0))
        def _():
            buf_a[...] = x0_ref[...]

        def layer_tile(src, dst):
            # src holds the FULL previous-layer activations (n_pad, 128) in f32.
            hp = src[...].astype(jnp.bfloat16)
            # (A + I) @ h  ==  (1 + eps) * h_i + sum_{j->i} h_j   (GIN, eps = 0)
            agg = jnp.dot(a_ref[...], hp, preferred_element_type=jnp.float32)
            bn = bn_ref[0]                                   # (8,128): b1, b2, scale, shift
            h = jnp.dot(agg.astype(jnp.bfloat16), w1s_ref[0],
                        preferred_element_type=jnp.float32)
            h = jnp.maximum(h + bn[0:1, :], 0.0)             # Linear -> ReLU
            h = jnp.dot(h.astype(jnp.bfloat16), w2s_ref[0],
                        preferred_element_type=jnp.float32)
            h = jnp.maximum(h + bn[1:2, :], 0.0)             # Linear, then F.relu(conv(.))
            h = h * bn[2:3, :] + bn[3:4, :]                  # BatchNorm1d (eval scale/shift)
            r0 = pl.multiple_of(i * tm, tm)
            dst[pl.ds(r0, tm), :] = h

        # Ping-pong the activation buffers based on layer parity.
        @pl.when(l % 2 == 0)
        def _():
            layer_tile(buf_a, buf_b)

        @pl.when(l % 2 == 1)
        def _():
            layer_tile(buf_b, buf_a)

        final_buf = buf_b if final_parity == 0 else buf_a

        # Fused head: global_add_pool -> fc1 -> ReLU -> (dropout id) -> fc2 -> log_softmax.
        @pl.when(jnp.logical_and(l == num_layers - 1, i == n_tiles - 1))
        def _():
            hfin = final_buf[...].astype(jnp.bfloat16)
            pooled = jnp.dot(p_ref[...], hfin, preferred_element_type=jnp.float32)
            h = jnp.dot(pooled.astype(jnp.bfloat16), fc1w_ref[...],
                        preferred_element_type=jnp.float32)
            h = jnp.maximum(h + hb_ref[0:1, :], 0.0)
            # TODO(synk): dropout(p=0.5) is identity here (inference semantics).
            logits = jnp.dot(h.astype(jnp.bfloat16), fc2w_ref[...],
                             preferred_element_type=jnp.float32) + hb_ref[1:2, :]
            col = jax.lax.broadcasted_iota(jnp.int32, logits.shape, 1)
            logits = jnp.where(col < num_classes, logits, -1e30)   # mask padded classes
            m = jnp.max(logits, axis=-1, keepdims=True)
            z = logits - m
            lse = jnp.log(jnp.sum(jnp.exp(z), axis=-1, keepdims=True))
            o_ref[...] = z - lse

    return kernel


def gin_mlp_forward(params, x, edge_index, batch, num_graphs, *, tm=256):
    n, _ = x.shape
    layers = params["layers"]
    num_layers = len(layers)
    num_classes = params["fc2_w"].shape[1]

    tm = max(8, min(_ceil_to(tm, 8), _ceil_to(n, 8)))
    n_pad = _ceil_to(n, tm)
    n_tiles = n_pad // tm
    g_pad = _ceil_to(max(num_graphs, 1), 8)

    # Dense adjacency with the GIN self term folded in: (A + I), A[i, j] = #edges j->i.
    src, dst = edge_index[0], edge_index[1]
    a = jnp.zeros((n, n), jnp.float32).at[dst, src].add(1.0) + jnp.eye(n, dtype=jnp.float32)
    a_hat = _pad2(a, n_pad, n_pad).astype(jnp.bfloat16)

    # Node features, zero-padded to lane-dense 128 channels.
    x0 = _pad2(x.astype(jnp.float32), n_pad, D_PAD)

    # Pooling matrix P[g, i] = 1 if batch[i] == g.
    p = (jnp.arange(g_pad, dtype=batch.dtype)[:, None] == batch[None, :]).astype(jnp.float32)
    p = _pad2(p, g_pad, n_pad).astype(jnp.bfloat16)

    # Stacked, zero-padded per-layer weights (bf16 for the MXU) and packed per-layer
    # vectors: rows = [b1, b2, bn_scale, bn_shift].
    w1s = jnp.stack([_pad2(layer["w1"], D_PAD, D_PAD) for layer in layers]).astype(jnp.bfloat16)
    w2s = jnp.stack([_pad2(layer["w2"], D_PAD, D_PAD) for layer in layers]).astype(jnp.bfloat16)

    def _pack_layer_vecs(layer):
        scale = layer["gamma"] / jnp.sqrt(layer["running_var"] + 1e-5)
        shift = layer["beta"] - layer["running_mean"] * scale
        return _pad2(jnp.stack([layer["b1"], layer["b2"], scale, shift]), 8, D_PAD)

    bns = jnp.stack([_pack_layer_vecs(layer) for layer in layers])   # (L, 8, 128) f32

    fc1w = _pad2(params["fc1_w"], D_PAD, D_PAD).astype(jnp.bfloat16)
    fc2w = _pad2(params["fc2_w"], D_PAD, D_PAD).astype(jnp.bfloat16)
    hb = (jnp.zeros((8, D_PAD), jnp.float32)
          .at[0, : params["fc1_b"].shape[0]].set(params["fc1_b"])
          .at[1, : params["fc2_b"].shape[0]].set(params["fc2_b"]))

    kernel = _make_kernel(num_layers, tm, n_tiles, num_classes)

    grid_spec = pltpu.PrefetchScalarGridSpec(
        num_scalar_prefetch=0,
        grid=(num_layers, n_tiles),
        in_specs=[
            pl.BlockSpec((tm, n_pad), lambda l, i: (i, 0)),           # A row strip (pipelined)
            pl.BlockSpec((n_pad, D_PAD), lambda l, i: (0, 0)),        # x0 (fetched once)
            pl.BlockSpec((1, D_PAD, D_PAD), lambda l, i: (l, 0, 0)),  # w1 of layer l
            pl.BlockSpec((1, D_PAD, D_PAD), lambda l, i: (l, 0, 0)),  # w2 of layer l
            pl.BlockSpec((1, 8, D_PAD), lambda l, i: (l, 0, 0)),      # b1/b2/scale/shift
            pl.BlockSpec((g_pad, n_pad), lambda l, i: (0, 0)),        # pooling matrix
            pl.BlockSpec((D_PAD, D_PAD), lambda l, i: (0, 0)),        # fc1_w
            pl.BlockSpec((D_PAD, D_PAD), lambda l, i: (0, 0)),        # fc2_w
            pl.BlockSpec((8, D_PAD), lambda l, i: (0, 0)),            # fc1_b / fc2_b
        ],
        out_specs=pl.BlockSpec((g_pad, D_PAD), lambda l, i: (0, 0)),
        scratch_shapes=[
            pltpu.VMEM((n_pad, D_PAD), jnp.float32),   # ping activations
            pltpu.VMEM((n_pad, D_PAD), jnp.float32),   # pong activations
        ],
    )

    out = pl.pallas_call(
        kernel,
        out_shape=jax.ShapeDtypeStruct((g_pad, D_PAD), jnp.float32),
        grid_spec=grid_spec,
        compiler_params=pltpu.CompilerParams(
            dimension_semantics=("arbitrary", "arbitrary")),
    )(a_hat, x0, w1s, w2s, bns, p, fc1w, fc2w, hb)

    return out[:num_graphs, :num_classes]


# ----------------------------- parameters / reference -----------------------------

def _linear_init(key, fan_in, fan_out):
    kw, kb = jax.random.split(key)
    bound = 1.0 / jnp.sqrt(float(fan_in))
    w = jax.random.uniform(kw, (fan_in, fan_out), jnp.float32, -bound, bound)
    b = jax.random.uniform(kb, (fan_out,), jnp.float32, -bound, bound)
    return w, b


def init_params(key, num_features, num_classes, dim=32):
    keys = jax.random.split(key, 12)
    layers = []
    in_dim = num_features
    for i in range(5):
        w1, b1 = _linear_init(keys[2 * i], in_dim, dim)
        w2, b2 = _linear_init(keys[2 * i + 1], dim, dim)
        layers.append(dict(
            w1=w1, b1=b1, w2=w2, b2=b2,
            gamma=jnp.ones((dim,), jnp.float32),
            beta=jnp.zeros((dim,), jnp.float32),
            running_mean=jnp.zeros((dim,), jnp.float32),
            running_var=jnp.ones((dim,), jnp.float32),
        ))
        in_dim = dim
    fc1_w, fc1_b = _linear_init(keys[10], dim, dim)
    fc2_w, fc2_b = _linear_init(keys[11], dim, num_classes)
    return dict(layers=layers, fc1_w=fc1_w, fc1_b=fc1_b, fc2_w=fc2_w, fc2_b=fc2_b)


def reference_forward(params, x, edge_index, batch, num_graphs):
    n = x.shape[0]
    src, dst = edge_index[0], edge_index[1]
    a = jnp.zeros((n, n), jnp.float32).at[dst, src].add(1.0)
    h = x.astype(jnp.float32)
    for layer in params["layers"]:
        agg = h + a @ h
        t = jnp.maximum(agg @ layer["w1"] + layer["b1"], 0.0)
        t = t @ layer["w2"] + layer["b2"]
        t = jnp.maximum(t, 0.0)
        scale = layer["gamma"] / jnp.sqrt(layer["running_var"] + 1e-5)
        shift = layer["beta"] - layer["running_mean"] * scale
        h = t * scale + shift
    pooled = jnp.zeros((num_graphs, h.shape[1]), jnp.float32).at[batch].add(h)
    t = jnp.maximum(pooled @ params["fc1_w"] + params["fc1_b"], 0.0)
    logits = t @ params["fc2_w"] + params["fc2_b"]
    return jax.nn.log_softmax(logits, axis=-1)


if __name__ == "__main__":
    num_features, num_classes, dim = 8, 4, 32
    num_nodes, num_edges, num_graphs = 16, 40, 2

    key = jax.random.PRNGKey(0)
    k_params, k_x, k_src, k_dst = jax.random.split(key, 4)

    params = init_params(k_params, num_features, num_classes, dim)
    x = jax.random.normal(k_x, (num_nodes, num_features), jnp.float32)
    src = jax.random.randint(k_src, (num_edges,), 0, num_nodes, jnp.int32)
    dst = jax.random.randint(k_dst, (num_edges,), 0, num_nodes, jnp.int32)
    edge_index = jnp.stack([src, dst], axis=0)                  # (2, E)
    batch = jnp.repeat(jnp.arange(num_graphs, dtype=jnp.int32),
                       num_nodes // num_graphs)                 # (N,)

    # tm=8 -> 2 node-row tiles, exercising the (layer, row_tile) grid at small N.
    out = gin_mlp_forward(params, x, edge_index, batch, num_graphs, tm=8)
    out = jax.block_until_ready(out)

    assert out.shape == (num_graphs, num_classes)
    # log_softmax rows must exp-sum to 1
    assert jnp.allclose(jnp.sum(jnp.exp(out), axis=-1), 1.0, atol=1e-3)
    # bf16 kernel vs f32 pure-JAX reference (loose tolerance for the bf16 path)
    ref = reference_forward(params, x, edge_index, batch, num_graphs)
    assert jnp.allclose(out, ref, atol=0.2), (out, ref)

    print("KERNEL_OK")
</pallas_src>

<mosaic_0001>
module attributes {stable_mosaic.version = 11 : i64} {
  func.func @kernel(%arg0: i32, %arg1: i32, %arg2: memref<8x16xbf16, #tpu.memory_space<vmem>>, %arg3: memref<16x128xf32, #tpu.memory_space<vmem>>, %arg4: memref<1x128x128xbf16, #tpu.memory_space<vmem>>, %arg5: memref<1x128x128xbf16, #tpu.memory_space<vmem>>, %arg6: memref<1x8x128xf32, #tpu.memory_space<vmem>>, %arg7: memref<8x16xbf16, #tpu.memory_space<vmem>>, %arg8: memref<128x128xbf16, #tpu.memory_space<vmem>>, %arg9: memref<128x128xbf16, #tpu.memory_space<vmem>>, %arg10: memref<8x128xf32, #tpu.memory_space<vmem>>, %arg11: memref<8x128xf32, #tpu.memory_space<vmem>>, %arg12: memref<16x128xf32, #tpu.memory_space<vmem>>, %arg13: memref<16x128xf32, #tpu.memory_space<vmem>>) attributes {dimension_semantics = [#tpu.dimension_semantics<arbitrary>, #tpu.dimension_semantics<arbitrary>], iteration_bounds = array<i64: 5, 2>, scalar_prefetch = 0 : i64, scratch_operands = 2 : i64, tpu.core_type = #tpu.core_type<tc>, window_params = [{transform_indices = @transform_0, window_bounds = array<i64: 8, 16>}, {pipeline_mode = #tpu.pipeline_mode<synchronous>, transform_indices = @transform_1, window_bounds = array<i64: 16, 128>}, {transform_indices = @transform_2, window_bounds = array<i64: 1, 128, 128>}, {transform_indices = @transform_3, window_bounds = array<i64: 1, 128, 128>}, {transform_indices = @transform_4, window_bounds = array<i64: 1, 8, 128>}, {pipeline_mode = #tpu.pipeline_mode<synchronous>, transform_indices = @transform_5, window_bounds = array<i64: 8, 16>}, {pipeline_mode = #tpu.pipeline_mode<synchronous>, transform_indices = @transform_6, window_bounds = array<i64: 128, 128>}, {pipeline_mode = #tpu.pipeline_mode<synchronous>, transform_indices = @transform_7, window_bounds = array<i64: 128, 128>}, {pipeline_mode = #tpu.pipeline_mode<synchronous>, transform_indices = @transform_8, window_bounds = array<i64: 8, 128>}, {pipeline_mode = #tpu.pipeline_mode<synchronous>, transform_indices = @transform_9, window_bounds = array<i64: 8, 128>}]} {
    %c0_i32 = arith.constant 0 : i32
    %0 = arith.cmpi eq, %arg0, %c0_i32 : i32
    %c0_i32_0 = arith.constant 0 : i32
    %1 = arith.cmpi eq, %arg1, %c0_i32_0 : i32
    %2 = arith.andi %0, %1 : i1
    %3 = arith.extui %2 : i1 to i32
    %c0_i32_1 = arith.constant 0 : i32
    %4 = arith.cmpi ne, %3, %c0_i32_1 : i32
    scf.if %4 {
      %c0 = arith.constant 0 : index
      %c0_18 = arith.constant 0 : index
      %36 = vector.load %arg3[%c0, %c0_18] : memref<16x128xf32, #tpu.memory_space<vmem>>, vector<16x128xf32>
      %c0_19 = arith.constant 0 : index
      %c0_20 = arith.constant 0 : index
      %37 = vector.load %arg12[%c0_19, %c0_20] : memref<16x128xf32, #tpu.memory_space<vmem>>, vector<16x128xf32>
      tpu.vector_store %arg12[%c0_19, %c0_20], %36 {strides = array<i32>} : memref<16x128xf32, #tpu.memory_space<vmem>>, vector<16x128xf32>,
    } else {
    }
    %c2_i32 = arith.constant 2 : i32
    %c0_i32_2 = arith.constant 0 : i32
    %5 = arith.cmpi eq, %c2_i32, %c0_i32_2 : i32
    %c1_i32 = arith.constant 1 : i32
    %6 = arith.select %5, %c1_i32, %c2_i32 : i32
    %7 = arith.remsi %arg0, %6 : i32
    %c0_i32_3 = arith.constant 0 : i32
    %8 = arith.cmpi ne, %7, %c0_i32_3 : i32
    %c0_i32_4 = arith.constant 0 : i32
    %9 = arith.cmpi slt, %7, %c0_i32_4 : i32
    %c0_i32_5 = arith.constant 0 : i32
    %10 = arith.cmpi slt, %6, %c0_i32_5 : i32
    %11 = arith.xori %9, %10 : i1
    %12 = arith.andi %11, %8 : i1
    %13 = arith.addi %7, %6 : i32
    %14 = arith.select %12, %13, %7 : i32
    %c0_i32_6 = arith.constant 0 : i32
    %15 = arith.cmpi eq, %14, %c0_i32_6 : i32
    %16 = arith.extui %15 : i1 to i32
    %c0_i32_7 = arith.constant 0 : i32
    %17 = arith.cmpi ne, %16, %c0_i32_7 : i32
    scf.if %17 {
      %c0 = arith.constant 0 : index
      %c0_18 = arith.constant 0 : index
      %36 = vector.load %arg12[%c0, %c0_18] : memref<16x128xf32, #tpu.memory_space<vmem>>, vector<16x128xf32>
      %37 = arith.truncf %36 : vector<16x128xf32> to vector<16x128xbf16>
      %c0_19 = arith.constant 0 : index
      %c0_20 = arith.constant 0 : index
      %38 = vector.load %arg2[%c0_19, %c0_20] : memref<8x16xbf16, #tpu.memory_space<vmem>>, vector<8x16xbf16>
      %cst = arith.constant dense<0.000000e+00> : vector<8x128xf32>
      %39 = tpu.matmul %38, %37, %cst {dimension_numbers = #tpu.dot_dimension_numbers<[1], [0], [0], [1], [0, 0, 1, 1], [], []>} : vector<8x16xbf16>, vector<16x128xbf16>, vector<8x128xf32> -> vector<8x128xf32>
      %c0_21 = arith.constant 0 : index
      %c0_22 = arith.constant 0 : index
      %c0_23 = arith.constant 0 : index
      %40 = vector.load %arg6[%c0_21, %c0_22, %c0_23] : memref<1x8x128xf32, #tpu.memory_space<vmem>>, vector<1x8x128xf32>
      %41 = vector.shape_cast %40 : vector<1x8x128xf32> to vector<8x128xf32>
      %42 = arith.truncf %39 : vector<8x128xf32> to vector<8x128xbf16>
      %c0_24 = arith.constant 0 : index
      %c0_25 = arith.constant 0 : index
      %c0_26 = arith.constant 0 : index
      %43 = vector.load %arg4[%c0_24, %c0_25, %c0_26] : memref<1x128x128xbf16, #tpu.memory_space<vmem>>, vector<1x128x128xbf16>
      %44 = vector.shape_cast %43 : vector<1x128x128xbf16> to vector<128x128xbf16>
      %cst_27 = arith.constant dense<0.000000e+00> : vector<8x128xf32>
      %45 = tpu.matmul %42, %44, %cst_27 {dimension_numbers = #tpu.dot_dimension_numbers<[1], [0], [0], [1], [0, 0, 1, 1], [], []>} : vector<8x128xbf16>, vector<128x128xbf16>, vector<8x128xf32> -> vector<8x128xf32>
      %46 = vector.extract_strided_slice %41 {offsets = [0, 0], sizes = [1, 128], strides = [1, 1]} : vector<8x128xf32> to vector<1x128xf32>
      %47 = vector.broadcast %46 : vector<1x128xf32> to vector<8x128xf32>
      %48 = arith.addf %45, %47 : vector<8x128xf32>
      %cst_28 = arith.constant 0.000000e+00 : f32
      %49 = vector.broadcast %cst_28 : f32 to vector<8x128xf32>
      %50 = arith.maximumf %48, %49 : vector<8x128xf32>
      %51 = arith.truncf %50 : vector<8x128xf32> to vector<8x128xbf16>
      %c0_29 = arith.constant 0 : index
      %c0_30 = arith.constant 0 : index
      %c0_31 = arith.constant 0 : index
      %52 = vector.load %arg5[%c0_29, %c0_30, %c0_31] : memref<1x128x128xbf16, #tpu.memory_space<vmem>>, vector<1x128x128xbf16>
      %53 = vector.shape_cast %52 : vector<1x128x128xbf16> to vector<128x128xbf16>
      %cst_32 = arith.constant dense<0.000000e+00> : vector<8x128xf32>
      %54 = tpu.matmul %51, %53, %cst_32 {dimension_numbers = #tpu.dot_dimension_numbers<[1], [0], [0], [1], [0, 0, 1, 1], [], []>} : vector<8x128xbf16>, vector<128x128xbf16>, vector<8x128xf32> -> vector<8x128xf32>
      %55 = vector.extract_strided_slice %41 {offsets = [1, 0], sizes = [1, 128], strides = [1, 1]} : vector<8x128xf32> to vector<1x128xf32>
      %56 = vector.broadcast %55 : vector<1x128xf32> to vector<8x128xf32>
      %57 = arith.addf %54, %56 : vector<8x128xf32>
      %cst_33 = arith.constant 0.000000e+00 : f32
      %58 = vector.broadcast %cst_33 : f32 to vector<8x128xf32>
      %59 = arith.maximumf %57, %58 : vector<8x128xf32>
      %60 = vector.extract_strided_slice %41 {offsets = [2, 0], sizes = [1, 128], strides = [1, 1]} : vector<8x128xf32> to vector<1x128xf32>
      %61 = vector.broadcast %60 : vector<1x128xf32> to vector<8x128xf32>
      %62 = arith.mulf %59, %61 : vector<8x128xf32>
      %63 = vector.extract_strided_slice %41 {offsets = [3, 0], sizes = [1, 128], strides = [1, 1]} : vector<8x128xf32> to vector<1x128xf32>
      %64 = vector.broadcast %63 : vector<1x128xf32> to vector<8x128xf32>
      %65 = arith.addf %62, %64 : vector<8x128xf32>
      %c8_i32 = arith.constant 8 : i32
      %66 = arith.muli %arg1, %c8_i32 : i32
      %67 = tpu.assume_multiple %66, 8 : i32
      %68 = arith.index_cast %67 : i32 to index
      %c0_34 = arith.constant 0 : index
      %69 = vector.load %arg13[%68, %c0_34] : memref<16x128xf32, #tpu.memory_space<vmem>>, vector<8x128xf32>
      tpu.vector_store %arg13[%68, %c0_34], %65 {strides = array<i32>} : memref<16x128xf32, #tpu.memory_space<vmem>>, vector<8x128xf32>,
    } else {
    }
    %c2_i32_8 = arith.constant 2 : i32
    %c0_i32_9 = arith.constant 0 : i32
    %18 = arith.cmpi eq, %c2_i32_8, %c0_i32_9 : i32
    %c1_i32_10 = arith.constant 1 : i32
    %19 = arith.select %18, %c1_i32_10, %c2_i32_8 : i32
    %20 = arith.remsi %arg0, %19 : i32
    %c0_i32_11 = arith.constant 0 : i32
    %21 = arith.cmpi ne, %20, %c0_i32_11 : i32
    %c0_i32_12 = arith.constant 0 : i32
    %22 = arith.cmpi slt, %20, %c0_i32_12 : i32
    %c0_i32_13 = arith.constant 0 : i32
    %23 = arith.cmpi slt, %19, %c0_i32_13 : i32
    %24 = arith.xori %22, %23 : i1
    %25 = arith.andi %24, %21 : i1
    %26 = arith.addi %20, %19 : i32
    %27 = arith.select %25, %26, %20 : i32
    %c1_i32_14 = arith.constant 1 : i32
    %28 = arith.cmpi eq, %27, %c1_i32_14 : i32
    %29 = arith.extui %28 : i1 to i32
    %c0_i32_15 = arith.constant 0 : i32
    %30 = arith.cmpi ne, %29, %c0_i32_15 : i32
    scf.if %30 {
      %c0 = arith.constant 0 : index
      %c0_18 = arith.constant 0 : index
      %36 = vector.load %arg13[%c0, %c0_18] : memref<16x128xf32, #tpu.memory_space<vmem>>, vector<16x128xf32>
      %37 = arith.truncf %36 : vector<16x128xf32> to vector<16x128xbf16>
      %c0_19 = arith.constant 0 : index
      %c0_20 = arith.constant 0 : index
      %38 = vector.load %arg2[%c0_19, %c0_20] : memref<8x16xbf16, #tpu.memory_space<vmem>>, vector<8x16xbf16>
      %cst = arith.constant dense<0.000000e+00> : vector<8x128xf32>
      %39 = tpu.matmul %38, %37, %cst {dimension_numbers = #tpu.dot_dimension_numbers<[1], [0], [0], [1], [0, 0, 1, 1], [], []>} : vector<8x16xbf16>, vector<16x128xbf16>, vector<8x128xf32> -> vector<8x128xf32>
      %c0_21 = arith.constant 0 : index
      %c0_22 = arith.constant 0 : index
      %c0_23 = arith.constant 0 : index
      %40 = vector.load %arg6[%c0_21, %c0_22, %c0_23] : memref<1x8x128xf32, #tpu.memory_space<vmem>>, vector<1x8x128xf32>
      %41 = vector.shape_cast %40 : vector<1x8x128xf32> to vector<8x128xf32>
      %42 = arith.truncf %39 : vector<8x128xf32> to vector<8x128xbf16>
      %c0_24 = arith.constant 0 : index
      %c0_25 = arith.constant 0 : index
      %c0_26 = arith.constant 0 : index
      %43 = vector.load %arg4[%c0_24, %c0_25, %c0_26] : memref<1x128x128xbf16, #tpu.memory_space<vmem>>, vector<1x128x128xbf16>
      %44 = vector.shape_cast %43 : vector<1x128x128xbf16> to vector<128x128xbf16>
      %cst_27 = arith.constant dense<0.000000e+00> : vector<8x128xf32>
      %45 = tpu.matmul %42, %44, %cst_27 {dimension_numbers = #tpu.dot_dimension_numbers<[1], [0], [0], [1], [0, 0, 1, 1], [], []>} : vector<8x128xbf16>, vector<128x128xbf16>, vector<8x128xf32> -> vector<8x128xf32>
      %46 = vector.extract_strided_slice %41 {offsets = [0, 0], sizes = [1, 128], strides = [1, 1]} : vector<8x128xf32> to vector<1x128xf32>
      %47 = vector.broadcast %46 : vector<1x128xf32> to vector<8x128xf32>
      %48 = arith.addf %45, %47 : vector<8x128xf32>
      %cst_28 = arith.constant 0.000000e+00 : f32
      %49 = vector.broadcast %cst_28 : f32 to vector<8x128xf32>
      %50 = arith.maximumf %48, %49 : vector<8x128xf32>
      %51 = arith.truncf %50 : vector<8x128xf32> to vector<8x128xbf16>
      %c0_29 = arith.constant 0 : index
      %c0_30 = arith.constant 0 : index
      %c0_31 = arith.constant 0 : index
      %52 = vector.load %arg5[%c0_29, %c0_30, %c0_31] : memref<1x128x128xbf16, #tpu.memory_space<vmem>>, vector<1x128x128xbf16>
      %53 = vector.shape_cast %52 : vector<1x128x128xbf16> to vector<128x128xbf16>
      %cst_32 = arith.constant dense<0.000000e+00> : vector<8x128xf32>
      %54 = tpu.matmul %51, %53, %cst_32 {dimension_numbers = #tpu.dot_dimension_numbers<[1], [0], [0], [1], [0, 0, 1, 1], [], []>} : vector<8x128xbf16>, vector<128x128xbf16>, vector<8x128xf32> -> vector<8x128xf32>
      %55 = vector.extract_strided_slice %41 {offsets = [1, 0], sizes = [1, 128], strides = [1, 1]} : vector<8x128xf32> to vector<1x128xf32>
      %56 = vector.broadcast %55 : vector<1x128xf32> to vector<8x128xf32>
      %57 = arith.addf %54, %56 : vector<8x128xf32>
      %cst_33 = arith.constant 0.000000e+00 : f32
      %58 = vector.broadcast %cst_33 : f32 to vector<8x128xf32>
      %59 = arith.maximumf %57, %58 : vector<8x128xf32>
      %60 = vector.extract_strided_slice %41 {offsets = [2, 0], sizes = [1, 128], strides = [1, 1]} : vector<8x128xf32> to vector<1x128xf32>
      %61 = vector.broadcast %60 : vector<1x128xf32> to vector<8x128xf32>
      %62 = arith.mulf %59, %61 : vector<8x128xf32>
      %63 = vector.extract_strided_slice %41 {offsets = [3, 0], sizes = [1, 128], strides = [1, 1]} : vector<8x128xf32> to vector<1x128xf32>
      %64 = vector.broadcast %63 : vector<1x128xf32> to vector<8x128xf32>
      %65 = arith.addf %62, %64 : vector<8x128xf32>
      %c8_i32 = arith.constant 8 : i32
      %66 = arith.muli %arg1, %c8_i32 : i32
      %67 = tpu.assume_multiple %66, 8 : i32
      %68 = arith.index_cast %67 : i32 to index
      %c0_34 = arith.constant 0 : index
      %69 = vector.load %arg12[%68, %c0_34] : memref<16x128xf32, #tpu.memory_space<vmem>>, vector<8x128xf32>
      tpu.vector_store %arg12[%68, %c0_34], %65 {strides = array<i32>} : memref<16x128xf32, #tpu.memory_space<vmem>>, vector<8x128xf32>,
    } else {
    }
    %c4_i32 = arith.constant 4 : i32
    %31 = arith.cmpi eq, %arg0, %c4_i32 : i32
    %c1_i32_16 = arith.constant 1 : i32
    %32 = arith.cmpi eq, %arg1, %c1_i32_16 : i32
    %33 = arith.andi %31, %32 : i1
    %34 = arith.extui %33 : i1 to i32
    %c0_i32_17 = arith.constant 0 : i32
    %35 = arith.cmpi ne, %34, %c0_i32_17 : i32
    scf.if %35 {
      %c0 = arith.constant 0 : index
      %c0_18 = arith.constant 0 : index
      %36 = vector.load %arg13[%c0, %c0_18] : memref<16x128xf32, #tpu.memory_space<vmem>>, vector<16x128xf32>
      %37 = arith.truncf %36 : vector<16x128xf32> to vector<16x128xbf16>
      %c0_19 = arith.constant 0 : index
      %c0_20 = arith.constant 0 : index
      %38 = vector.load %arg7[%c0_19, %c0_20] : memref<8x16xbf16, #tpu.memory_space<vmem>>, vector<8x16xbf16>
      %cst = arith.constant dense<0.000000e+00> : vector<8x128xf32>
      %39 = tpu.matmul %38, %37, %cst {dimension_numbers = #tpu.dot_dimension_numbers<[1], [0], [0], [1], [0, 0, 1, 1], [], []>} : vector<8x16xbf16>, vector<16x128xbf16>, vector<8x128xf32> -> vector<8x128xf32>
      %40 = arith.truncf %39 : vector<8x128xf32> to vector<8x128xbf16>
      %c0_21 = arith.constant 0 : index
      %c0_22 = arith.constant 0 : index
      %41 = vector.load %arg8[%c0_21, %c0_22] : memref<128x128xbf16, #tpu.memory_space<vmem>>, vector<128x128xbf16>
      %cst_23 = arith.constant dense<0.000000e+00> : vector<8x128xf32>
      %42 = tpu.matmul %40, %41, %cst_23 {dimension_numbers = #tpu.dot_dimension_numbers<[1], [0], [0], [1], [0, 0, 1, 1], [], []>} : vector<8x128xbf16>, vector<128x128xbf16>, vector<8x128xf32> -> vector<8x128xf32>
      %c0_24 = arith.constant 0 : index
      %c0_25 = arith.constant 0 : index
      %43 = vector.load %arg10[%c0_24, %c0_25] : memref<8x128xf32, #tpu.memory_space<vmem>>, vector<1x128xf32>
      %44 = vector.broadcast %43 : vector<1x128xf32> to vector<8x128xf32>
      %45 = arith.addf %42, %44 : vector<8x128xf32>
      %cst_26 = arith.constant 0.000000e+00 : f32
      %46 = vector.broadcast %cst_26 : f32 to vector<8x128xf32>
      %47 = arith.maximumf %45, %46 : vector<8x128xf32>
      %48 = arith.truncf %47 : vector<8x128xf32> to vector<8x128xbf16>
      %c0_27 = arith.constant 0 : index
      %c0_28 = arith.constant 0 : index
      %49 = vector.load %arg9[%c0_27, %c0_28] : memref<128x128xbf16, #tpu.memory_space<vmem>>, vector<128x128xbf16>
      %cst_29 = arith.constant dense<0.000000e+00> : vector<8x128xf32>
      %50 = tpu.matmul %48, %49, %cst_29 {dimension_numbers = #tpu.dot_dimension_numbers<[1], [0], [0], [1], [0, 0, 1, 1], [], []>} : vector<8x128xbf16>, vector<128x128xbf16>, vector<8x128xf32> -> vector<8x128xf32>
      %c1 = arith.constant 1 : index
      %c0_30 = arith.constant 0 : index
      %51 = vector.load %arg10[%c1, %c0_30] : memref<8x128xf32, #tpu.memory_space<vmem>>, vector<1x128xf32>
      %52 = vector.broadcast %51 : vector<1x128xf32> to vector<8x128xf32>
      %53 = arith.addf %50, %52 : vector<8x128xf32>
      %54 = tpu.iota {dimensions = array<i32: 1>} : vector<8x128xi32>
      %c4_i32_31 = arith.constant 4 : i32
      %55 = vector.broadcast %c4_i32_31 : i32 to vector<8x128xi32>
      %56 = arith.cmpi slt, %54, %55 : vector<8x128xi32>
      %cst_32 = arith.constant -1.000000e+30 : f32
      %57 = vector.broadcast %cst_32 : f32 to vector<8x128xf32>
      %58 = arith.select %56, %53, %57 : vector<8x128xi1>, vector<8x128xf32>
      %cst_33 = arith.constant dense<0xFF800000> : vector<8xf32>
      %59 = vector.multi_reduction <maximumf>, %58, %cst_33 [1] : vector<8x128xf32> to vector<8xf32>
      %60 = vector.shape_cast %59 : vector<8xf32> to vector<8x1xf32>
      %61 = vector.broadcast %60 : vector<8x1xf32> to vector<8x128xf32>
      %62 = arith.subf %58, %61 : vector<8x128xf32>
      %63 = math.exp %62 : vector<8x128xf32>
      %cst_34 = arith.constant dense<0.000000e+00> : vector<8xf32>
      %64 = vector.multi_reduction <add>, %63, %cst_34 [1] : vector<8x128xf32> to vector<8xf32>
      %65 = vector.shape_cast %64 : vector<8xf32> to vector<8x1xf32>
      %66 = math.log %65 : vector<8x1xf32>
      %67 = vector.broadcast %66 : vector<8x1xf32> to vector<8x128xf32>
      %68 = arith.subf %62, %67 : vector<8x128xf32>
      %c0_35 = arith.constant 0 : index
      %c0_36 = arith.constant 0 : index
      %69 = vector.load %arg11[%c0_35, %c0_36] : memref<8x128xf32, #tpu.memory_space<vmem>>, vector<8x128xf32>
      tpu.vector_store %arg11[%c0_35, %c0_36], %68 {strides = array<i32>} : memref<8x128xf32, #tpu.memory_space<vmem>>, vector<8x128xf32>,
    } else {
    }
    return
  }
  func.func @transform_0(%arg0: i32, %arg1: i32) -> (i32, i32) {
    %c0_i32 = arith.constant 0 : i32
    %c0_i32_0 = arith.constant 0 : i32
    return %arg1, %c0_i32 : i32, i32
  }
  func.func @transform_1(%arg0: i32, %arg1: i32) -> (i32, i32) {
    %c0_i32 = arith.constant 0 : i32
    %c0_i32_0 = arith.constant 0 : i32
    %c0_i32_1 = arith.constant 0 : i32
    return %c0_i32, %c0_i32_0 : i32, i32
  }
  func.func @transform_2(%arg0: i32, %arg1: i32) -> (i32, i32, i32) {
    %c0_i32 = arith.constant 0 : i32
    %c0_i32_0 = arith.constant 0 : i32
    %c0_i32_1 = arith.constant 0 : i32
    return %arg0, %c0_i32, %c0_i32_0 : i32, i32, i32
  }
  func.func @transform_3(%arg0: i32, %arg1: i32) -> (i32, i32, i32) {
    %c0_i32 = arith.constant 0 : i32
    %c0_i32_0 = arith.constant 0 : i32
    %c0_i32_1 = arith.constant 0 : i32
    return %arg0, %c0_i32, %c0_i32_0 : i32, i32, i32
  }
  func.func @transform_4(%arg0: i32, %arg1: i32) -> (i32, i32, i32) {
    %c0_i32 = arith.constant 0 : i32
    %c0_i32_0 = arith.constant 0 : i32
    %c0_i32_1 = arith.constant 0 : i32
    return %arg0, %c0_i32, %c0_i32_0 : i32, i32, i32
  }
  func.func @transform_5(%arg0: i32, %arg1: i32) -> (i32, i32) {
    %c0_i32 = arith.constant 0 : i32
    %c0_i32_0 = arith.constant 0 : i32
    %c0_i32_1 = arith.constant 0 : i32
    return %c0_i32, %c0_i32_0 : i32, i32
  }
  func.func @transform_6(%arg0: i32, %arg1: i32) -> (i32, i32) {
    %c0_i32 = arith.constant 0 : i32
    %c0_i32_0 = arith.constant 0 : i32
    %c0_i32_1 = arith.constant 0 : i32
    return %c0_i32, %c0_i32_0 : i32, i32
  }
  func.func @transform_7(%arg0: i32, %arg1: i32) -> (i32, i32) {
    %c0_i32 = arith.constant 0 : i32
    %c0_i32_0 = arith.constant 0 : i32
    %c0_i32_1 = arith.constant 0 : i32
    return %c0_i32, %c0_i32_0 : i32, i32
  }
  func.func @transform_8(%arg0: i32, %arg1: i32) -> (i32, i32) {
    %c0_i32 = arith.constant 0 : i32
    %c0_i32_0 = arith.constant 0 : i32
    %c0_i32_1 = arith.constant 0 : i32
    return %c0_i32, %c0_i32_0 : i32, i32
  }
  func.func @transform_9(%arg0: i32, %arg1: i32) -> (i32, i32) {
    %c0_i32 = arith.constant 0 : i32
    %c0_i32_0 = arith.constant 0 : i32
    %c0_i32_1 = arith.constant 0 : i32
    return %c0_i32, %c0_i32_0 : i32, i32
  }
}

</mosaic_0001>

<bundles_post_ra>
// kernel: tpu_custom_call.1
= control target key start
LH: loop header
LB: loop body
LE: loop exit
PB: predicated region body
PF: predicated region fallthrough
CT: control target
= control target key end

     0   :  { %s2958_s0 = inlined_call_operand.hbm [shape: bf16[16,16], index: 0, kind: input, shape index: {}]   ;;  %s2959_s1 = inlined_call_operand.hbm [shape: f32[16,128], index: 1, kind: input, shape index: {}]   ;;  %s2960_s2 = inlined_call_operand.hbm [shape: bf16[5,128,128], index: 2, kind: input, shape index: {}]   ;;  %s2961_s3 = inlined_call_operand.hbm [shape: bf16[5,128,128], index: 3, kind: input, shape index: {}]   ;;  %s2962_s4 = inlined_call_operand.hbm [shape: f32[5,8,128], index: 4, kind: input, shape index: {}]   ;;  %s2963_s5 = inlined_call_operand.vmem [shape: bf16[8,16], index: 5, kind: input, shape index: {}]   ;;  %s2964_s6 = inlined_call_operand.hbm [shape: bf16[128,128], index: 6, kind: input, shape index: {}]   ;;  %s2965_s7 = inlined_call_operand.hbm [shape: bf16[128,128], index: 7, kind: input, shape index: {}]   ;;  %s2966_s8 = inlined_call_operand.vmem [shape: f32[8,128], index: 8, kind: input, shape index: {}]   ;;  %s2967_s9 = inlined_call_operand.hbm [shape: f32[8,128], index: 9, kind: output, shape index: {}]  }
   0x1   :  { %2993 = sst [smem:[#allocation31_spill]] %s2958_s0 }
   0x2   :  { %2994 = sst [smem:[#allocation32_spill]] %s2959_s1 }
   0x3   :  { %2995 = sst [smem:[#allocation33_spill]] %s2960_s2 }
   0x4   :  { %2996 = sst [smem:[#allocation34_spill]] %s2961_s3 }
   0x5   :  { %2997 = sst [smem:[#allocation35_spill]] %s2963_s5 }
   0x6   :  { %2998 = sst [smem:[#allocation36_spill]] %s2966_s8 }
   0x7   :  { %2999 = sst [smem:[#allocation37_spill]] %s2967_s9 }
   0x8   :  { %14 = vsyncpa [#allocation5], 0 }
   0x9   :  { %16 = vsyncpa [#allocation5 + $0x1], 0 }
   0xa   :  { %17 = vsyncpa [#allocation8], 0 }
   0xb   :  { %18 = vsyncpa [#allocation14], 0 }
   0xc   :  { %19 = vsyncpa [#allocation6], 0  ;;  %s2455_s30 = smov 0   ;;  %s2457_s10 = smov 0  }
   0xd   :  { %s2459_s11 = smov 0   ;;  %s2461_s12 = smov 0  }
   0xe   :  { %s2463_s13 = smov 0   ;;  %s2465_s14 = smov 0  }
   0xf   :  { %s2467_s15 = smov 0   ;;  %s2469_s16 = smov 0  }
  0x10   :  { %s2471_s17 = smov 0   ;;  %s2473_s18 = smov 0  }
  0x11   :  { %s2475_s19 = smov 0  }
  0x12 LB: > { %3000 = sst [smem:[#allocation22_spill]] %s2365_s14  ;;  %s34_s20 = sadd.s32 1, %s2377_s17  ;;  %s2385_s19 = sphi %s2475_s19, %s25_s19   ;;  %s2381_s18 = sphi %s2473_s18, %s3065_s18   ;;  %s2377_s17 = sphi %s2471_s17, %s3057_s17   ;;  %s2373_s16 = sphi %s2469_s16, %s3064_s16   ;;  %s2369_s15 = sphi %s2467_s15, %s3056_s15   ;;  %s2365_s14 = sphi %s2465_s14, %s3055_s14   ;;  %s2361_s13 = sphi %s2463_s13, %s3063_s13   ;;  %s2357_s12 = sphi %s2461_s12, %s3062_s12   ;;  %s2353_s11 = sphi %s2459_s11, %s3061_s11   ;;  %s2349_s10 = sphi %s2457_s10, %s3060_s10   ;;  %s2345_s30 = sphi %s2455_s30, %s3059_s30  }
  0x13   : > { %3001 = sst [smem:[#allocation23_spill]] %s2369_s15  ;;  %s37_s21 = sadd.s32 1, %s2381_s18 }
  0x14   : > { %3002 = sst [smem:[#allocation24_spill]] %s2373_s16  ;;  %p35_p0 = scmp.ge.s32.totalorder %s34_s20, 2 }
  0x15   : > { %3003 = sst [smem:[#allocation25_spill]] %s2377_s17  ;;  %s44_s22 = sadd.s32 1, %s2365_s14 }
  0x16   : > { %3004 = sst [smem:[#allocation26_spill]] %s2385_s19  ;;  %p51_p1 = scmp.ne.s32.totalorder %s2365_s14, %s2361_s13 }
  0x17   : > { %p52_p2 = scmp.eq.s32.totalorder %s2385_s19, 0  ;;  %s3067_s20 = smov (%p35_p0, %s34_s20), 0 }
  0x18   : > { %3005 = sst [smem:[#allocation27_spill]] %s3067_s20  ;;  %s3069_s21 = smov (!%p35_p0, %s37_s21), %s2381_s18 }
  0x19   : > { %s41_s23 = ssub.s32 %s2377_s17, %s3067_s20  ;;  %p2523_p3 = por %p52_p2, %p51_p1 }
  0x1a   : > { %p39_p4 = scmp.ge.s32.totalorder %s3069_s21, 5  ;;  %p42_p5 = scmp.eq.s32.totalorder %s41_s23, 0 }
  0x1b   : > { %s91_s25 = sadd.s32 1, %s2353_s11  ;;  %p98_p7 = scmp.ne.s32.totalorder %s2353_s11, %s2349_s10 }
  0x1c   : > { %s3071_s21 = smov (%p39_p4, %s3069_s21), 0  ;;  %p1885_p11 = scmp.lt.s32.totalorder %s2385_s19, 10 }
  0x1d   : > { %3007 = sst [smem:[#allocation28_spill]] %s3071_s21  ;;  %s88_s27 = ssub.s32 %s2381_s18, %s3071_s21 }
  0x1e   : > { %s2533_s26 = scalar_select %p42_p5, %s2365_s14, %s44_s22  }
  0x1f   : > { %p89_p8 = scmp.eq.s32.totalorder %s88_s27, 0  ;;  %p100_p10 = por %p98_p7, %p52_p2 }
  0x20   : > { %3008 = sst [smem:[#allocation29_spill]] %s2533_s26  ;;  %s330_s29 = sand.u32 1, %s2385_s19  }
  0x21   : > { %s2544_s28 = scalar_select %p89_p8, %s2353_s11, %s91_s25  }
  0x22   : > { %s332_s20 = sand.u32 1, %s2365_s14   ;;  %s1554_s9 = sshll.u32 %s2377_s17, 6 }
  0x23   : > { %3009 = sst [smem:[#allocation30_spill]] %s2544_s28  ;;  %s1553_s23 = sshll.u32 %s332_s20, 2 }
  0x24   : > { %s3010_s0 = sld [smem:[#allocation31_spill]]  ;;  %s334_s22 = scalar_lea.vmem [#allocation4], %s1553_s23 }
  0x25   : > { %s341_s27 = sshll.u32 %s334_s22, 4  ;;  %p2557_p12 = pnand %p1885_p11, %p2523_p3  ;;  %s2561_s27 = int_to_ptr.vmem [resolvable:$true] %s341_s27 }
  0x26   : > { %p2563_p13 = pnand %p1885_p11, %p100_p10  ;;  %s2567_s5 = scalar_lea.sflag [#allocation5], %s330_s29 }
  0x27   : > { %p2047_p1 = pneg %p2557_p12 }
  0x28   : > { %s3012_s20 = scalar_select %p2563_p13, 1, 0 }
  0x2a   : > { %s2553_s15 = scalar_lea.hbm %s3010_s0, %s1554_s9  ;;  %s2050_s23 = scalar_lea.hbm %s3010_s0, 128 }
  0x2b   : > { %s2045_s8 = scalar_lea.hbm %s2553_s15, 64  ;;  %p2051_p4 = scmp.lt.u32.totalorder %s2553_s15, %s3010_s0 }
  0x2c   : > { %p2046_p0 = scmp.ne.s32.totalorder %s2553_s15, %s2045_s8  ;;  %p2052_p5 = scmp.lt.u32.totalorder %s2050_s23, %s2045_s8 }
  0x2d   : > { %p2054_p8 = scmp.lt.u32.totalorder %s2045_s8, %s2553_s15 }
  0x2e   : > { %p2048_p2 = pnand %p2047_p1, %p2046_p0  ;;  %p2053_p7 = por %p2052_p5, %p2051_p4 }
  0x30   : > { %p2049_p3 = pneg %p2048_p2  ;;  %p2055_p10 = por %p2054_p8, %p2053_p7 }
  0x32   : > { %p2056_p11 = pnand %p2055_p10, %p2049_p3 }
  0x34   : > { %2059 = shalt.err (!%p2056_p11)
}
  0x35   : > { %s2060_s29 = scalar_lea.vmem %s2561_s27, 64  ;;  %s2387_s9 = smov [#allocation4]  }
  0x36   : > { %p2061_p0 = scmp.ne.s32.totalorder %s2561_s27, %s2060_s29  ;;  %s2065_s24 = sshll.u32 %s2387_s9, 4  ;;  %s2066_s24 = int_to_ptr.vmem [resolvable:$false] %s2065_s24 }
  0x37   : > { %s2067_s21 = scalar_lea.vmem %s2066_s24, 128  ;;  %p2068_p6 = scmp.lt.s32.totalorder %s2561_s27, %s2066_s24 }
  0x38   : > { %p2063_p2 = pnand %p2061_p0, %p2047_p1  ;;  %p2069_p4 = scmp.lt.s32.totalorder %s2067_s21, %s2060_s29 }
  0x3a   : > { %p2064_p9 = pneg %p2063_p2  ;;  %p2070_p5 = por %p2069_p4, %p2068_p6 }
  0x3c   : > { %p2071_p7 = pnand %p2070_p5, %p2064_p9 }
  0x3e   : > { %2074 = shalt.err (!%p2071_p7)
}
  0x3f   : > { %1872 = dma.hbm_to_vmem [thread:$0]  (!%p2557_p12), %s2553_s15, 64, %s2561_s27, %s2567_s5  }
  0x40   : > { %s2972_s8 = sand.u32 1, %s2353_s11   ;;  %s2973_s23 = sshll.u32 %s2381_s18, 10 }
  0x41   : > { %s2599_s22 = sshll.u32 %s2972_s8, 6  ;;  %s3013_s2 = sld [smem:[#allocation33_spill]] }
  0x42   : > { %s352_s24 = scalar_lea.vmem [#allocation9], %s2599_s22  ;;  %p2615_p9 = pneg %p2563_p13 }
  0x43   : > { %s359_s21 = sshll.u32 %s352_s24, 4  ;;  %s2609_s21 = int_to_ptr.vmem [resolvable:$true] %s359_s21 }
  0x44   : > { %s3014_s27 = scalar_select %p2615_p9, 1, 0 }
  0x47   : > { %s2606_s25 = scalar_lea.hbm %s3013_s2, %s2973_s23  ;;  %s2080_s8 = scalar_lea.hbm %s3013_s2, 5120 }
  0x48   : > { %s2075_s15 = scalar_lea.hbm %s2606_s25, 1024  ;;  %p2081_p3 = scmp.lt.u32.totalorder %s2606_s25, %s3013_s2 }
  0x49   : > { %p2076_p6 = scmp.ne.s32.totalorder %s2606_s25, %s2075_s15  ;;  %p2082_p8 = scmp.lt.u32.totalorder %s2080_s8, %s2075_s15 }
  0x4a   : > { %p2084_p11 = scmp.lt.u32.totalorder %s2075_s15, %s2606_s25 }
  0x4b   : > { %p2078_p12 = pnand %p2615_p9, %p2076_p6  ;;  %p2083_p10 = por %p2082_p8, %p2081_p3 }
  0x4d   : > { %p2079_p1 = pneg %p2078_p12  ;;  %p2085_p0 = por %p2084_p11, %p2083_p10 }
  0x4f   : > { %p2086_p2 = pnand %p2085_p0, %p2079_p1 }
  0x51   : > { %2089 = shalt.err (!%p2086_p2)
}
  0x52   : > { %s2090_s24 = scalar_lea.vmem %s2609_s21, 1024  ;;  %s2388_s29 = smov [#allocation9]  }
  0x53   : > { %p2091_p4 = scmp.ne.s32.totalorder %s2609_s21, %s2090_s24  ;;  %s2095_s9 = sshll.u32 %s2388_s29, 4  ;;  %s2096_s9 = int_to_ptr.vmem [resolvable:$false] %s2095_s9 }
  0x54   : > { %s2097_s0 = scalar_lea.vmem %s2096_s9, 2048  ;;  %p2098_p6 = scmp.lt.s32.totalorder %s2609_s21, %s2096_s9 }
  0x55   : > { %p2093_p5 = pnand %p2091_p4, %p2615_p9  ;;  %p2099_p12 = scmp.lt.s32.totalorder %s2097_s0, %s2090_s24 }
  0x57   : > { %p2094_p7 = pneg %p2093_p5  ;;  %p2100_p3 = por %p2099_p12, %p2098_p6 }
  0x59   : > { %p2101_p8 = pnand %p2100_p3, %p2094_p7 }
  0x5b   : > { %2104 = shalt.err (!%p2101_p8)
}
  0x5c   : > { %s2974_s8 = smov 64   ;;  %s2976_s23 = smov 4  }
  0x5d   : > { %1875 = dma.hbm_to_vmem [thread:$0]  (!%p2563_p13), %s2606_s25, 1024, %s2609_s21, %s2567_s5, %s2974_s8, %s2974_s8, %s2976_s23  }
  0x5e   : > { %s2643_s15 = sadd.s32 4294967295, %s2385_s19   ;;  %p1548_p10 = scmp.ge.s32.totalorder %s2385_s19, 1 }
  0x5f   : > { %p2982_p1 = scmp.eq.s32.totalorder %s2643_s15, 0  ;;  %p272_p11 = scmp.lt.s32.totalorder %s2385_s19, 11 }
  0x60   : > { %p3015_p0 = scmp.ne.s32.totalorder %s2361_s13, %s2357_s12  ;;  %p3017_p4 = scmp.ne.s32.totalorder %s2349_s10, %s2345_s30 }
  0x61   : > { %p2666_p7 = pnand %p1548_p10, %p272_p11  ;;  %s2391_s21 = smov [#allocation7]  }
  0x62   : > { %p2653_p2 = por %p2982_p1, %p3015_p0  ;;  %p2662_p5 = por %p3017_p4, %p2982_p1 }
  0x63   : > { %s3019_s25 = scalar_select %p2666_p7, 1, 0 }
  0x64   : > { %s3016_s24 = scalar_select %p2653_p2, 1, 0 }
  0x65   : > { %s3018_s29 = scalar_select %p2662_p5, 1, 0 }
  0x66   : > { %s284_s9 = sshll.u32 %s2391_s21, 4  ;;  %p1859_p6 = pneg %p2666_p7  ;;  %s285_s9 = int_to_ptr.vmem [resolvable:$true] %s284_s9 }
  0x67   : > { %s3021_s30 = sshll.u32 %s2381_s18, 10  ;;  %s3022_s3 = sld [smem:[#allocation34_spill]] }
  0x68   : > { %p2674_p12 = pnand %p1859_p6, %p2982_p1  ;;  %s373_s2 = scalar_lea.vmem [#allocation10], %s2599_s22 }
  0x69   : > { %s380_s17 = sshll.u32 %s373_s2, 4  ;;  %s3023_s1 = sld [smem:[#allocation32_spill]]  ;;  %s2686_s17 = int_to_ptr.vmem [resolvable:$true] %s380_s17 }
  0x6a   : > { %s3020_s12 = scalar_select %p2674_p12, 1, 0 }
  0x6b   : > { %p2696_p8 = pneg %p2674_p12 }
  0x6d   : > { %s2683_s23 = scalar_lea.hbm %s3022_s3, %s3021_s30 }
  0x6f   : > { %s2105_s14 = scalar_lea.hbm %s3023_s1, 256 }
  0x70   : > { %p2106_p3 = scmp.ne.s32.totalorder %s3023_s1, %s2105_s14  ;;  %p2112_p0 = scmp.lt.u32.totalorder %s2105_s14, %s3023_s1 }
  0x72   : > { %p2108_p10 = pnand %p2696_p8, %p2106_p3 }
  0x74   : > { %p2109_p11 = pneg %p2108_p10 }
  0x76   : > { %p2114_p4 = pnand %p2112_p0, %p2109_p11 }
  0x78   : > { %2117 = shalt.err (!%p2114_p4)
}
  0x79   : > { %s2118_s26 = scalar_lea.vmem %s285_s9, 256  ;;  %p2126_p2 = scmp.lt.s32.totalorder %s285_s9, %s285_s9 }
  0x7a   : > { %p2119_p6 = scmp.ne.s32.totalorder %s285_s9, %s2118_s26  ;;  %p2127_p7 = scmp.lt.s32.totalorder %s2118_s26, %s2118_s26 }
  0x7c   : > { %p2121_p1 = pnand %p2119_p6, %p2696_p8  ;;  %p2128_p13 = por %p2127_p7, %p2126_p2 }
  0x7e   : > { %p2122_p5 = pneg %p2121_p1 }
  0x80   : > { %p2129_p9 = pnand %p2128_p13, %p2122_p5 }
  0x82   : > { %2132 = shalt.err (!%p2129_p9)
}
  0x83   : > { %s2392_s19 = smov 128   ;;  %s2393_s14 = smov 8  }
  0x84   : > { %1862 = dma.hbm_to_vmem [thread:$0]  (!%p2674_p12), %s3023_s1, 256, %s285_s9, [#allocation8], %s2392_s19, %s2392_s19, %s2393_s14  }
  0x85   : > { %s2133_s30 = scalar_lea.hbm %s2683_s23, 1024  ;;  %p3025_p3 = scmp.ne.s32.totalorder %s3014_s27, 0 }
  0x86   : > { %p2134_p1 = scmp.ne.s32.totalorder %s2683_s23, %s2133_s30  ;;  %s2138_s2 = scalar_lea.hbm %s3022_s3, 5120 }
  0x87   : > { %p2139_p13 = scmp.lt.u32.totalorder %s2683_s23, %s3022_s3  ;;  %p2140_p9 = scmp.lt.u32.totalorder %s2138_s2, %s2133_s30 }
  0x88   : > { %p2136_p10 = pnand %p2134_p1, %p3025_p3  ;;  %p2142_p7 = scmp.lt.u32.totalorder %s2133_s30, %s2683_s23 }
  0x89   : > { %p2141_p5 = por %p2140_p9, %p2139_p13 }
  0x8a   : > { %p2137_p2 = pneg %p2136_p10 }
  0x8b   : > { %p2143_p11 = por %p2142_p7, %p2141_p5 }
  0x8d   : > { %p2144_p0 = pnand %p2143_p11, %p2137_p2 }
  0x8f   : > { %2147 = shalt.err (!%p2144_p0)
}
  0x90   : > { %s2148_s9 = scalar_lea.vmem %s2686_s17, 1024  ;;  %s2394_s19 = smov [#allocation10]  }
  0x91   : > { %p2149_p4 = scmp.ne.s32.totalorder %s2686_s17, %s2148_s9  ;;  %s2153_s14 = sshll.u32 %s2394_s19, 4  ;;  %s2154_s14 = int_to_ptr.vmem [resolvable:$false] %s2153_s14 }
  0x92   : > { %s2155_s28 = scalar_lea.vmem %s2154_s14, 2048  ;;  %p2156_p10 = scmp.lt.s32.totalorder %s2686_s17, %s2154_s14 }
  0x93   : > { %p2151_p6 = pnand %p2149_p4, %p3025_p3  ;;  %p2157_p12 = scmp.lt.s32.totalorder %s2155_s28, %s2148_s9 }
  0x95   : > { %p2152_p1 = pneg %p2151_p6  ;;  %p2158_p13 = por %p2157_p12, %p2156_p10 }
  0x97   : > { %p2159_p9 = pnand %p2158_p13, %p2152_p1 }
  0x99   : > { %2162 = shalt.err (!%p2159_p9)
}
  0x9a   : > { %p3026_p2 = scmp.ne.s32.totalorder %s3012_s20, 0  ;;  %s3027_s8 = smov 4  }
  0x9b   : > { %s3028_s30 = smov 64   ;;  %s2395_s0 = smov [#allocation12]  }
  0x9c   : > { %1878 = dma.hbm_to_vmem [thread:$0]  (!%p3026_p2), %s2683_s23, 1024, %s2686_s17, %s2567_s5, %s3028_s30, %s3028_s30, %s3027_s8  }
  0x9d   : > { %s300_s21 = sshll.u32 %s2395_s0, 4  ;;  %s2396_s2 = smov [#allocation13]   ;;  %s301_s21 = int_to_ptr.vmem [resolvable:$true] %s300_s21 }
  0x9e   : > { %s313_s22 = sshll.u32 %s2396_s2, 4  ;;  %s2163_s19 = scalar_lea.hbm %s2964_s6, 1024  ;;  %s314_s22 = int_to_ptr.vmem [resolvable:$true] %s313_s22 }
  0x9f   : > { %p2164_p12 = scmp.ne.s32.totalorder %s2964_s6, %s2163_s19  ;;  %p2170_p11 = scmp.lt.u32.totalorder %s2163_s19, %s2964_s6 }
  0xa1   : > { %p2166_p5 = pnand %p2164_p12, %p2696_p8 }
  0xa3   : > { %p2167_p7 = pneg %p2166_p5 }
  0xa5   : > { %p2172_p0 = pnand %p2170_p11, %p2167_p7 }
  0xa7   : > { %2175 = shalt.err (!%p2172_p0)
}
  0xa8   : > { %s2176_s17 = scalar_lea.vmem %s301_s21, 1024  ;;  %p2184_p10 = scmp.lt.s32.totalorder %s301_s21, %s301_s21 }
  0xa9   : > { %p2177_p4 = scmp.ne.s32.totalorder %s301_s21, %s2176_s17  ;;  %p2185_p13 = scmp.lt.s32.totalorder %s2176_s17, %s2176_s17 }
  0xab   : > { %p2179_p6 = pnand %p2177_p4, %p2696_p8  ;;  %p2186_p9 = por %p2185_p13, %p2184_p10 }
  0xad   : > { %p2180_p1 = pneg %p2179_p6 }
  0xaf   : > { %p2187_p2 = pnand %p2186_p9, %p2180_p1 }
  0xb1   : > { %2190 = shalt.err (!%p2187_p2)
}
  0xb2   : > { %p3029_p12 = scmp.ne.s32.totalorder %s3020_s12, 0  ;;  %s3030_s23 = sand.u32 1, %s2353_s11  }
  0xb3   : > { %s1561_s0 = sshll.u32 %s3030_s23, 3  ;;  %s2191_s9 = scalar_lea.hbm %s2965_s7, 1024 }
  0xb4   : > { %1865 = dma.hbm_to_vmem [thread:$0]  (!%p3029_p12), %s2964_s6, 1024, %s301_s21, [#allocation8], %s3028_s30, %s3028_s30, %s3027_s8  }
  0xb5   : > { %p2192_p2 = scmp.ne.s32.totalorder %s2965_s7, %s2191_s9  ;;  %p2198_p11 = scmp.lt.u32.totalorder %s2191_s9, %s2965_s7 }
  0xb7   : > { %p2194_p5 = pnand %p2192_p2, %p2696_p8 }
  0xb9   : > { %p2195_p7 = pneg %p2194_p5 }
  0xbb   : > { %p2200_p0 = pnand %p2198_p11, %p2195_p7 }
  0xbd   : > { %2203 = shalt.err (!%p2200_p0)
}
  0xbe   : > { %s2204_s21 = scalar_lea.vmem %s314_s22, 1024  ;;  %p2212_p10 = scmp.lt.s32.totalorder %s314_s22, %s314_s22 }
  0xbf   : > { %p2205_p4 = scmp.ne.s32.totalorder %s314_s22, %s2204_s21  ;;  %p2213_p13 = scmp.lt.s32.totalorder %s2204_s21, %s2204_s21 }
  0xc1   : > { %p2207_p6 = pnand %p2205_p4, %p2696_p8  ;;  %p2214_p9 = por %p2213_p13, %p2212_p10 }
  0xc3   : > { %p2208_p1 = pneg %p2207_p6 }
  0xc5   : > { %p2215_p3 = pnand %p2214_p9, %p2208_p1 }
  0xc7   : > { %2218 = shalt.err (!%p2215_p3)
}
  0xc8   : > { %1868 = dma.hbm_to_vmem [thread:$0]  (!%p3029_p12), %s2965_s7, 1024, %s314_s22, [#allocation14], %s3028_s30, %s3028_s30, %s3027_s8  }
  0xc9   : > { %s1562_s23 = sshll.u32 %s2381_s18, 7  ;;  %s394_s12 = scalar_lea.vmem [#allocation11], %s1561_s0 }
  0xca   : > { %s2785_s26 = scalar_lea.hbm %s2962_s4, %s1562_s23  ;;  %s401_s9 = sshll.u32 %s394_s12, 4  ;;  %s402_s9 = int_to_ptr.vmem [resolvable:$true] %s401_s9 }
  0xcb   : > { %s2219_s19 = scalar_lea.hbm %s2785_s26, 128  ;;  %p3031_p3 = scmp.ne.s32.totalorder %s3014_s27, 0 }
  0xcc   : > { %p2220_p8 = scmp.ne.s32.totalorder %s2785_s26, %s2219_s19  ;;  %s2224_s30 = scalar_lea.hbm %s2962_s4, 640 }
  0xcd   : > { %p2225_p12 = scmp.lt.u32.totalorder %s2785_s26, %s2962_s4  ;;  %p2226_p7 = scmp.lt.u32.totalorder %s2224_s30, %s2219_s19 }
  0xce   : > { %p2222_p2 = pnand %p2220_p8, %p3031_p3  ;;  %p2228_p0 = scmp.lt.u32.totalorder %s2219_s19, %s2785_s26 }
  0xcf   : > { %p2227_p11 = por %p2226_p7, %p2225_p12 }
  0xd0   : > { %p2223_p5 = pneg %p2222_p2 }
  0xd1   : > { %p2229_p4 = por %p2228_p0, %p2227_p11 }
  0xd3   : > { %p2230_p6 = pnand %p2229_p4, %p2223_p5 }
  0xd5   : > { %2233 = shalt.err (!%p2230_p6)
}
  0xd6   : > { %s2234_s0 = scalar_lea.vmem %s402_s9, 128  ;;  %s2397_s17 = smov [#allocation11]  }
  0xd7   : > { %p2235_p1 = scmp.ne.s32.totalorder %s402_s9, %s2234_s0  ;;  %s2239_s21 = sshll.u32 %s2397_s17, 4  ;;  %s2240_s21 = int_to_ptr.vmem [resolvable:$false] %s2239_s21 }
  0xd8   : > { %s2241_s1 = scalar_lea.vmem %s2240_s21, 256  ;;  %p2242_p9 = scmp.lt.s32.totalorder %s402_s9, %s2240_s21 }
  0xd9   : > { %p2237_p10 = pnand %p2235_p1, %p3031_p3  ;;  %p2243_p8 = scmp.lt.s32.totalorder %s2241_s1, %s2234_s0 }
  0xdb   : > { %p2238_p13 = pneg %p2237_p10  ;;  %p2244_p2 = por %p2243_p8, %p2242_p9 }
  0xdd   : > { %p2245_p7 = pnand %p2244_p2, %p2238_p13 }
  0xdf   : > { %2248 = shalt.err (!%p2245_p7)
}
  0xe0   : > { %p3032_p12 = scmp.ne.s32.totalorder %s3012_s20, 0  ;;  %p3033_p5 = scmp.ne.s32.totalorder %s3019_s25, 0 }
  0xe1   : > { %s412_s27 = sand.u32 (!%p3033_p5), 1, %s2643_s15   ;;  %s414_s3 = sand.u32 (!%p3033_p5), 1, %s2361_s13  }
  0xe2   : > { %1881 = dma.hbm_to_vmem [thread:$0]  (!%p3032_p12), %s2785_s26, 128, %s402_s9, %s2567_s5  }
  0xe3   : > { %410 = sbr.rel (%p3033_p5) target bundleno = 2614 (0xa36), region = 56  ;;  %s2809_s23 = sshll.u32 (!%p3033_p5), %s414_s3, 2 }
  0xe4   : > { %s413_s16 = scalar_lea.sflag (!%p3033_p5), [#allocation5], %s412_s27  ;;  %s416_s2 = scalar_lea.vmem (!%p3033_p5), [#allocation4], %s2809_s23 }
  0xe5   : > { %p3034_p3 = scmp.ne.s32.totalorder (!%p3033_p5), %s3016_s24, 0 }
  0xea   : > { %2320 = dma.done.wait (%p3034_p3), %s413_s16, 64  }
  0xeb   : > { %2322 = vsyncadd (%p3034_p3), %s413_s16, 4294967232  ;;  %p3035_p11 = scmp.eq.s32.totalorder %s2643_s15, 0 }
  0xed   : > { %2324 = dma.done.wait (%p3035_p11), [#allocation8], 256   ;;  %p3036_p0 = pmov %p3035_p11 }
  0xee   : > { %s427_s20 = sand.u32 1, %s2349_s10   ;;  %p3037_p4 = scmp.ne.s32.totalorder %s3018_s29, 0 }
  0xef   : > { %2326 = vsyncadd (%p3036_p0), [#allocation8], 4294967040  ;;  %s1566_s5 = sshll.u32 %s427_s20, 6 }
  0xf0   : > { %s2821_s25 = scalar_lea.vmem [#allocation9], %s1566_s5 }
  0xf1   : > { %2328 = dma.done.wait (%p3037_p4), %s413_s16, 2176  }
  0xf2   : > { %2330 = vsyncadd (%p3037_p4), %s413_s16, 4294965120  ;;  %s2827_s24 = sshll.u32 %s427_s20, 3  ;;  %s2829_s26 = scalar_lea.vmem [#allocation10], %s1566_s5 }
  0xf3   : > { %s447_s12 = scalar_lea.vmem [#allocation11], %s2827_s24  ;;  %p3038_p6 = pmov %p3036_p0 }
  0xf4   : > { %p3039_p1 = pmov %p3036_p0 }
  0xf5   : > { %2332 = dma.done.wait (%p3038_p6), [#allocation8], 1024  }
  0xf6   : > { %2334 = vsyncadd (%p3039_p1), [#allocation8], 4294966272  ;;  %p3040_p10 = pmov %p3036_p0 }
  0xf7   : > { %p3041_p13 = pmov %p3036_p0 }
  0xf8   : > { %2336 = dma.done.wait (%p3040_p10), [#allocation14], 1024  }
  0xf9   : > { %2338 = vsyncadd (%p3041_p13), [#allocation14], 4294966272  ;;  %s3042_s29 = sld [smem:[#allocation24_spill]]  ;;  %s3043_s9 = sld [smem:[#allocation23_spill]] }
  0xff   : > { %p501_p9 = scmp.eq.s32.totalorder %s3042_s29, 0  ;;  %p502_p8 = scmp.eq.s32.totalorder %s3043_s9, 0 }
 0x101   : > { %p503_p2 = pnand %p502_p8, %p501_p9 }
 0x102   : > { %v507_v0 = vld [vmem:[#allocation7] sm:$0xff] (!%p503_p2)  ;;  %v508_v1 = vld [vmem:[#allocation7 + $0x8] sm:$0xff] (!%p503_p2) }
 0x103   : > { %506 = sbr.rel (%p503_p2) target bundleno = 266 (0x10a), region = 88  ;;  %509 = vst [vmem:[#allocation2] sm:$0xff] (!%p503_p2), %v507_v0  ;;  %510 = vst [vmem:[#allocation2 + $0x8] sm:$0xff] (!%p503_p2), %v508_v1 }
 0x10a PF: > { %s3044_s19 = sld [smem:[#allocation24_spill]] }
 0x110   : > { %p511_p7 = scmp.lt.s32.totalorder %s3044_s19, 0  ;;  %s512_s14 = ssub.s32 0, %s3044_s19 }
 0x111   : > { %s1571_s8 = smin.u32 %s3044_s19, %s512_s14 }
 0x112   : > { %s514_s30 = sand.u32 1, %s1571_s8  }
 0x113   : > { %s515_s22 = ssub.s32 0, %s514_s30 }
 0x114   : > { %s3073_s22 = smov (!%p511_p7, %s515_s22), %s514_s30 }
 0x115   : > { %p1573_p12 = scmp.lt.s32.totalorder %s3073_s22, 0  ;;  %s521_s28 = sadd.s32 2, %s3073_s22 }
 0x117   : > { %s3075_s28 = smov (!%p1573_p12, %s521_s28), %s3073_s22 }
 0x118   : > { %p1574_p5 = scmp.ne.s32.totalorder %s3075_s28, 0 }
 0x119   : > { %v527_v2 = vld [vmem:[#allocation2] sm:$0xff] (!%p1574_p5)  ;;  %v528_v3 = vld [vmem:[#allocation2 + $0x8] sm:$0xff] (!%p1574_p5)  ;;  %v2398_v4 = vmov (!%p1574_p5), 0.0   ;;  %vm2399_vm0 = vmmov (!%p1574_p5), 0   ;;  %v1993_v6 = vld [vmem:[%s2821_s25] sm:$0xff] (!%p1574_p5)   ;;  %vm531_vm1 = vcmask (!%p1574_p5), 130048   ;;  %v593_v28 = vlaneseq (!%p1574_p5) }
 0x11a   : > { %526 = sbr.rel (%p1574_p5) target bundleno = 940 (0x3ac), region = 92  ;;  %1697 = vmatprep.subr.bf16.mxu0 (!%p1574_p5), %v2398_v4  ;;  %v529_v5 = vpack.c.bf16 (!%p1574_p5), %v528_v3, %v527_v2  ;;  %1699 = vmatprep.mubr.msk.bf16.mxu0 (!%p1574_p5), %vm2399_vm0, %v2398_v4  ;;  %v530_v7 = vld [vmem:[%s416_s2] sm:$0xf] (!%p1574_p5)  ;;  %v1995_v9 = vld [vmem:[%s2821_s25 + $0x10] sm:$0xff] (!%p1574_p5)   ;;  %v1996_v10 = vld [vmem:[%s2821_s25 + $0x18] sm:$0xff] (!%p1574_p5)   ;;  %s3045_s0 = sld [smem:[#allocation23_spill]] (!%p1574_p5) }
 0x11b   : > { %1703 = vmatprep.subr.bf16.mxu1 (!%p1574_p5), %v2398_v4  ;;  %1719 = vmatprep.mubr.msk.bf16.mxu1 (!%p1574_p5), %vm2399_vm0, %v2398_v4  ;;  %v1994_v8 = vld [vmem:[%s2821_s25 + $0x8] sm:$0xff] (!%p1574_p5)   ;;  %v1997_v11 = vld [vmem:[%s2821_s25 + $0x20] sm:$0xff] (!%p1574_p5)   ;;  %v1999_v13 = vld [vmem:[%s2821_s25 + $0x30] sm:$0xff] (!%p1574_p5)   ;;  %v594_v29 = vshrl.u32 (!%p1574_p5), %v593_v28, 7 }
 0x11c   : > { %1698 = vmatpush3.bf16.msra.mxu0 (!%p1574_p5), %v529_v5  ;;  %1704 = vmatpush3.bf16.msra.mxu1 (!%p1574_p5), %v1993_v6  ;;  %v1998_v12 = vld [vmem:[%s2821_s25 + $0x28] sm:$0xff] (!%p1574_p5)   ;;  %v2000_v14 = vld [vmem:[%s2821_s25 + $0x38] sm:$0xff] (!%p1574_p5)   ;;  %v2001_v15 = vld [vmem:[%s2829_s26] sm:$0xff] (!%p1574_p5)  }
 0x11d   : > { %1705 = vmatprep.subr.bf16.mxu1 (!%p1574_p5), %v2398_v4  ;;  %1723 = vmatprep.subr.bf16.mxu0 (!%p1574_p5), %v2398_v4  ;;  %v2002_v16 = vld [vmem:[%s2829_s26 + $0x8] sm:$0xff] (!%p1574_p5)   ;;  %v2003_v17 = vld [vmem:[%s2829_s26 + $0x10] sm:$0xff] (!%p1574_p5)   ;;  %v2004_v18 = vld [vmem:[%s2829_s26 + $0x18] sm:$0xff] (!%p1574_p5)   ;;  %v595_v30 = vsub.s32 (!%p1574_p5), 0, %v594_v29  ;;  %v705_v40 = vsub.s32 (!%p1574_p5), 1, %v594_v29  ;;  %v798_v42 = vsub.s32 (!%p1574_p5), 2, %v594_v29 }
 0x11e   : > { %v2005_v19 = vld [vmem:[%s2829_s26 + $0x20] sm:$0xff] (!%p1574_p5)   ;;  %v2006_v20 = vld [vmem:[%s2829_s26 + $0x28] sm:$0xff] (!%p1574_p5)   ;;  %v2007_v26 = vld [vmem:[%s2829_s26 + $0x30] sm:$0xff] (!%p1574_p5)   ;;  %v803_v43 = vsub.s32 (!%p1574_p5), 3, %v594_v29 }
 0x11f   : > { %1700 = vmatmul.mubr.msk.bf16.vlgmr.msra.gmra.mrb[0].mxu0 (!%p1574_p5), %vm531_vm1, %v530_v7  ;;  %v2008_v27 = vld [vmem:[%s2829_s26 + $0x38] sm:$0xff] (!%p1574_p5)   ;;  %v575_v31 = vld [vmem:[%s447_s12] sm:$0xff] (!%p1574_p5) }
 0x120   : > { %1706 = vmatpush3.bf16.msra.mxu1 (!%p1574_p5), %v1994_v8  ;;  %1739 = vmatprep.mubr.msk.bf16.mxu0 (!%p1574_p5), %vm2399_vm0, %v2398_v4  ;;  %v596_v32 = vrot.slane (!%p1574_p5), %v575_v31, %v595_v30  ;;  %v706_v41 = vrot.slane (!%p1574_p5), %v575_v31, %v705_v40  ;;  %v799_v46 = vrot.slane (!%p1574_p5), %v575_v31, %v798_v42  ;;  %s1592_s17 = sshll.u32 (!%p1574_p5), %s3045_s0, 3 }
 0x121   : > { %1707 = vmatprep.subr.bf16.mxu1 %v2398_v4  ;;  %1724 = vmatpush3.bf16.msra.mxu0 %v2001_v15  ;;  %v804_v50 = vrot.slane %v575_v31, %v803_v43  ;;  %s807_s21 = scalar_lea.vmem [#allocation3], %s1592_s17 }
 0x122   : > { %1725 = vmatprep.subr.bf16.mxu0 %v2398_v4 }
 0x124   : > { %1708 = vmatpush3.bf16.msra.mxu1 %v1995_v9 }
 0x125   : > { %1709 = vmatprep.subr.bf16.mxu1 %v2398_v4  ;;  %1726 = vmatpush3.bf16.msra.mxu0 %v2002_v16 }
 0x126   : > { %1727 = vmatprep.subr.bf16.mxu0 %v2398_v4 }
 0x128   : > { %1710 = vmatpush3.bf16.msra.mxu1 %v1996_v10 }
 0x129   : > { %1711 = vmatprep.subr.bf16.mxu1 %v2398_v4  ;;  %1728 = vmatpush3.bf16.msra.mxu0 %v2003_v17 }
 0x12a   : > { %1729 = vmatprep.subr.bf16.mxu0 %v2398_v4 }
 0x12c   : > { %1712 = vmatpush3.bf16.msra.mxu1 %v1997_v11 }
 0x12d   : > { %1713 = vmatprep.subr.bf16.mxu1 %v2398_v4  ;;  %1730 = vmatpush3.bf16.msra.mxu0 %v2004_v18 }
 0x12e   : > { %1731 = vmatprep.subr.bf16.mxu0 %v2398_v4 }
 0x130   : > { %1714 = vmatpush3.bf16.msra.mxu1 %v1998_v12 }
 0x131   : > { %1715 = vmatprep.subr.bf16.mxu1 %v2398_v4  ;;  %1732 = vmatpush3.bf16.msra.mxu0 %v2005_v19 }
 0x132   : > { %1733 = vmatprep.subr.bf16.mxu0 %v2398_v4 }
 0x134   : > { %1716 = vmatpush3.bf16.msra.mxu1 %v1999_v13 }
 0x135   : > { %1717 = vmatprep.subr.bf16.mxu1 %v2398_v4  ;;  %1734 = vmatpush3.bf16.msra.mxu0 %v2006_v20 }
 0x136   : > { %1735 = vmatprep.subr.bf16.mxu0 %v2398_v4 }
 0x138   : > { %1718 = vmatpush3.bf16.msra.mxu1 %v2000_v14 }
 0x139   : > { %1736 = vmatpush3.bf16.msra.mxu0 %v2007_v26 }
 0x13a   : > { %1737 = vmatprep.subr.bf16.mxu0 %v2398_v4 }
 0x13d   : > { %1738 = vmatpush3.bf16.msra.mxu0 %v2008_v27 }
 0x1f2   : > { %v569_v21 = vpop.f32.mrb[0].mxu0 }
 0x1f3   : > { %v576_v22 = vpack.c.bf16 %v569_v21, %v569_v21  ;;  %v1701_v23 = vpop.f32.mrb[1].mxu0 }
 0x1f4   : > { %v572_v24 = vpop.f32.mrb[2].mxu0 }
 0x1f5   : > { %v1702_v25 = vpop.f32.mrb[3].mxu0  ;;  %1720 = vmatmul.mubr.bf16.vlgmr.msra.gmra.mrb[0].mxu1 %v576_v22 }
 0x2c8   : > { %v679_v33 = vpop.f32.mrb[0].mxu1 }
 0x2c9   : > { %v680_v34 = vadd.f32 %v679_v33, %v596_v32  ;;  %v1721_v35 = vpop.f32.mrb[1].mxu1 }
 0x2ca   : > { %v682_v36 = vpop.f32.mrb[2].mxu1 }
 0x2cb   : > { %v685_v37 = vmax.f32 %v680_v34, 0.0  ;;  %v1722_v38 = vpop.f32.mrb[3].mxu1 }
 0x2cd   : > { %v686_v39 = vpack.c.bf16 %v685_v37, %v685_v37 }
 0x2cf   : > { %1740 = vmatmul.mubr.bf16.vlgmr.msra.gmra.mrb[4].mxu0 %v686_v39 }
 0x3a2   : > { %v789_v44 = vpop.f32.mrb[4].mxu0 }
 0x3a3   : > { %v790_v45 = vadd.f32 %v789_v44, %v706_v41  ;;  %v1741_v47 = vpop.f32.mrb[5].mxu0 }
 0x3a4   : > { %v792_v48 = vpop.f32.mrb[6].mxu0 }
 0x3a5   : > { %v795_v49 = vmax.f32 %v790_v45, 0.0  ;;  %v1742_v51 = vpop.f32.mrb[7].mxu0 }
 0x3a7   : > { %v800_v52 = vmul.f32 %v799_v46, %v795_v49 }
 0x3a9   : > { %v805_v53 = vadd.f32 %v804_v50, %v800_v52 }
 0x3ab   : > { %808 = vst [vmem:[%s807_s21] sm:$0xff] %v805_v53 }
 0x3ac PF: > { %p1593_p3 = scmp.ne.s32.totalorder %s3075_s28, 1 }
 0x3ad   : > { %v2400_v56 = vmov (!%p1593_p3), 0.0   ;;  %vm2401_vm2 = vmmov (!%p1593_p3), 0   ;;  %v2009_v58 = vld [vmem:[%s2821_s25] sm:$0xff] (!%p1593_p3)   ;;  %v816_v59 = vld [vmem:[%s416_s2] sm:$0xf] (!%p1593_p3)  ;;  %vm817_vm3 = vcmask (!%p1593_p3), 130048   ;;  %v879_v16 = vlaneseq (!%p1593_p3) }
 0x3ae   : > { %812 = sbr.rel (%p1593_p3) target bundleno = 1605 (0x645), region = 96  ;;  %1743 = vmatprep.subr.bf16.mxu0 (!%p1593_p3), %v2400_v56  ;;  %1745 = vmatprep.mubr.msk.bf16.mxu0 (!%p1593_p3), %vm2401_vm2, %v2400_v56  ;;  %v2010_v60 = vld [vmem:[%s2821_s25 + $0x8] sm:$0xff] (!%p1593_p3)   ;;  %v2011_v61 = vld [vmem:[%s2821_s25 + $0x10] sm:$0xff] (!%p1593_p3)   ;;  %v2012_v62 = vld [vmem:[%s2821_s25 + $0x18] sm:$0xff] (!%p1593_p3)   ;;  %s3046_s1 = sld [smem:[#allocation23_spill]] (!%p1593_p3) }
 0x3af   : > { %1749 = vmatprep.subr.bf16.mxu1 (!%p1593_p3), %v2400_v56  ;;  %1765 = vmatprep.mubr.msk.bf16.mxu1 (!%p1593_p3), %vm2401_vm2, %v2400_v56  ;;  %v2013_v63 = vld [vmem:[%s2821_s25 + $0x20] sm:$0xff] (!%p1593_p3)   ;;  %v2014_v0 = vld [vmem:[%s2821_s25 + $0x28] sm:$0xff] (!%p1593_p3)   ;;  %v2015_v1 = vld [vmem:[%s2821_s25 + $0x30] sm:$0xff] (!%p1593_p3)   ;;  %v880_v17 = vshrl.u32 (!%p1593_p3), %v879_v16, 7 }
 0x3b0   : > { %1750 = vmatpush3.bf16.msra.mxu1 (!%p1593_p3), %v2009_v58  ;;  %v2016_v2 = vld [vmem:[%s2821_s25 + $0x38] sm:$0xff] (!%p1593_p3)   ;;  %v2017_v3 = vld [vmem:[%s2829_s26] sm:$0xff] (!%p1593_p3)   ;;  %v2018_v4 = vld [vmem:[%s2829_s26 + $0x8] sm:$0xff] (!%p1593_p3)  }
 0x3b1   : > { %1751 = vmatprep.subr.bf16.mxu1 (!%p1593_p3), %v2400_v56  ;;  %v2019_v5 = vld [vmem:[%s2829_s26 + $0x10] sm:$0xff] (!%p1593_p3)   ;;  %v2020_v6 = vld [vmem:[%s2829_s26 + $0x18] sm:$0xff] (!%p1593_p3)   ;;  %v2021_v7 = vld [vmem:[%s2829_s26 + $0x20] sm:$0xff] (!%p1593_p3)   ;;  %v881_v18 = vsub.s32 (!%p1593_p3), 0, %v880_v17  ;;  %v991_v28 = vsub.s32 (!%p1593_p3), 1, %v880_v17  ;;  %v1084_v30 = vsub.s32 (!%p1593_p3), 2, %v880_v17 }
 0x3b2   : > { %v813_v54 = vld [vmem:[#allocation3] sm:$0xff] (!%p1593_p3)  ;;  %v814_v55 = vld [vmem:[#allocation3 + $0x8] sm:$0xff] (!%p1593_p3)  ;;  %v2022_v8 = vld [vmem:[%s2829_s26 + $0x28] sm:$0xff] (!%p1593_p3)   ;;  %v1089_v31 = vsub.s32 (!%p1593_p3), 3, %v880_v17 }
 0x3b3   : > { %v815_v57 = vpack.c.bf16 (!%p1593_p3), %v814_v55, %v813_v54  ;;  %v2023_v14 = vld [vmem:[%s2829_s26 + $0x30] sm:$0xff] (!%p1593_p3)   ;;  %v2024_v15 = vld [vmem:[%s2829_s26 + $0x38] sm:$0xff] (!%p1593_p3)   ;;  %v861_v19 = vld [vmem:[%s447_s12] sm:$0xff] (!%p1593_p3) }
 0x3b4   : > { %1752 = vmatpush3.bf16.msra.mxu1 (!%p1593_p3), %v2010_v60  ;;  %v882_v20 = vrot.slane (!%p1593_p3), %v861_v19, %v881_v18  ;;  %v992_v29 = vrot.slane (!%p1593_p3), %v861_v19, %v991_v28  ;;  %v1085_v34 = vrot.slane (!%p1593_p3), %v861_v19, %v1084_v30  ;;  %v1090_v38 = vrot.slane (!%p1593_p3), %v861_v19, %v1089_v31  ;;  %s1611_s27 = sshll.u32 (!%p1593_p3), %s3046_s1, 3 }
 0x3b5   : > { %1744 = vmatpush3.bf16.msra.mxu0 %v815_v57  ;;  %1753 = vmatprep.subr.bf16.mxu1 %v2400_v56  ;;  %s1093_s3 = scalar_lea.vmem [#allocation2], %s1611_s27 }
 0x3b6   : > { %1769 = vmatprep.subr.bf16.mxu0 %v2400_v56 }
 0x3b8   : > { %1746 = vmatmul.mubr.msk.bf16.vlgmr.msra.gmra.mrb[0].mxu0 %vm817_vm3, %v816_v59  ;;  %1754 = vmatpush3.bf16.msra.mxu1 %v2011_v61 }
 0x3b9   : > { %1785 = vmatprep.mubr.msk.bf16.mxu0 %vm2401_vm2, %v2400_v56  ;;  %1755 = vmatprep.subr.bf16.mxu1 %v2400_v56 }
 0x3ba   : > { %1770 = vmatpush3.bf16.msra.mxu0 %v2017_v3 }
 0x3bb   : > { %1771 = vmatprep.subr.bf16.mxu0 %v2400_v56 }
 0x3bc   : > { %1756 = vmatpush3.bf16.msra.mxu1 %v2012_v62 }
 0x3bd   : > { %1757 = vmatprep.subr.bf16.mxu1 %v2400_v56 }
 0x3be   : > { %1772 = vmatpush3.bf16.msra.mxu0 %v2018_v4 }
 0x3bf   : > { %1773 = vmatprep.subr.bf16.mxu0 %v2400_v56 }
 0x3c0   : > { %1758 = vmatpush3.bf16.msra.mxu1 %v2013_v63 }
 0x3c1   : > { %1759 = vmatprep.subr.bf16.mxu1 %v2400_v56 }
 0x3c2   : > { %1774 = vmatpush3.bf16.msra.mxu0 %v2019_v5 }
 0x3c3   : > { %1775 = vmatprep.subr.bf16.mxu0 %v2400_v56 }
 0x3c4   : > { %1760 = vmatpush3.bf16.msra.mxu1 %v2014_v0 }
 0x3c5   : > { %1761 = vmatprep.subr.bf16.mxu1 %v2400_v56 }
 0x3c6   : > { %1776 = vmatpush3.bf16.msra.mxu0 %v2020_v6 }
 0x3c7   : > { %1777 = vmatprep.subr.bf16.mxu0 %v2400_v56 }
 0x3c8   : > { %1762 = vmatpush3.bf16.msra.mxu1 %v2015_v1 }
 0x3c9   : > { %1763 = vmatprep.subr.bf16.mxu1 %v2400_v56 }
 0x3ca   : > { %1778 = vmatpush3.bf16.msra.mxu0 %v2021_v7 }
 0x3cb   : > { %1779 = vmatprep.subr.bf16.mxu0 %v2400_v56 }
 0x3cc   : > { %1764 = vmatpush3.bf16.msra.mxu1 %v2016_v2 }
 0x3ce   : > { %1780 = vmatpush3.bf16.msra.mxu0 %v2022_v8 }
 0x3cf   : > { %1781 = vmatprep.subr.bf16.mxu0 %v2400_v56 }
 0x3d2   : > { %1782 = vmatpush3.bf16.msra.mxu0 %v2023_v14 }
 0x3d3   : > { %1783 = vmatprep.subr.bf16.mxu0 %v2400_v56 }
 0x3d6   : > { %1784 = vmatpush3.bf16.msra.mxu0 %v2024_v15 }
 0x48b   : > { %v855_v9 = vpop.f32.mrb[0].mxu0 }
 0x48c   : > { %v862_v10 = vpack.c.bf16 %v855_v9, %v855_v9  ;;  %v1747_v11 = vpop.f32.mrb[1].mxu0 }
 0x48d   : > { %v858_v12 = vpop.f32.mrb[2].mxu0 }
 0x48e   : > { %v1748_v13 = vpop.f32.mrb[3].mxu0  ;;  %1766 = vmatmul.mubr.bf16.vlgmr.msra.gmra.mrb[0].mxu1 %v862_v10 }
 0x561   : > { %v965_v21 = vpop.f32.mrb[0].mxu1 }
 0x562   : > { %v966_v22 = vadd.f32 %v965_v21, %v882_v20  ;;  %v1767_v23 = vpop.f32.mrb[1].mxu1 }
 0x563   : > { %v968_v24 = vpop.f32.mrb[2].mxu1 }
 0x564   : > { %v971_v25 = vmax.f32 %v966_v22, 0.0  ;;  %v1768_v26 = vpop.f32.mrb[3].mxu1 }
 0x566   : > { %v972_v27 = vpack.c.bf16 %v971_v25, %v971_v25 }
 0x568   : > { %1786 = vmatmul.mubr.bf16.vlgmr.msra.gmra.mrb[4].mxu0 %v972_v27 }
 0x63b   : > { %v1075_v32 = vpop.f32.mrb[4].mxu0 }
 0x63c   : > { %v1076_v33 = vadd.f32 %v1075_v32, %v992_v29  ;;  %v1787_v35 = vpop.f32.mrb[5].mxu0 }
 0x63d   : > { %v1078_v36 = vpop.f32.mrb[6].mxu0 }
 0x63e   : > { %v1081_v37 = vmax.f32 %v1076_v33, 0.0  ;;  %v1788_v39 = vpop.f32.mrb[7].mxu0 }
 0x640   : > { %v1086_v40 = vmul.f32 %v1085_v34, %v1081_v37 }
 0x642   : > { %v1091_v41 = vadd.f32 %v1090_v38, %v1086_v40 }
 0x644   : > { %1094 = vst [vmem:[%s1093_s3] sm:$0xff] %v1091_v41 }
 0x645 PF: > { %s3047_s23 = sld [smem:[#allocation24_spill]]  ;;  %s3048_s16 = sld [smem:[#allocation23_spill]] }
 0x64b   : > { %p1095_p11 = scmp.eq.s32.totalorder %s3047_s23, 4  ;;  %p1096_p0 = scmp.eq.s32.totalorder %s3048_s16, 1 }
 0x64d   : > { %p1097_p4 = pnand %p1096_p0, %p1095_p11 }
 0x64e   : > { %v1101_v42 = vld [vmem:[#allocation3] sm:$0xff] (!%p1097_p4)  ;;  %v1102_v43 = vld [vmem:[#allocation3 + $0x8] sm:$0xff] (!%p1097_p4)  ;;  %v2402_v44 = vmov (!%p1097_p4), 0.0   ;;  %vm2403_vm4 = vmmov (!%p1097_p4), 0   ;;  %v2025_v46 = vld [vmem:[#allocation12] sm:$0xff] (!%p1097_p4)   ;;  %s3049_s5 = sld [smem:[#allocation35_spill]] (!%p1097_p4)  ;;  %v1370_v12 = vlaneseq (!%p1097_p4) }
 0x64f   : > { %1100 = sbr.rel (%p1097_p4) target bundleno = 2583 (0xa17), region = 100  ;;  %1789 = vmatprep.subr.bf16.mxu0 (!%p1097_p4), %v2402_v44  ;;  %v1103_v45 = vpack.c.bf16 (!%p1097_p4), %v1102_v43, %v1101_v42  ;;  %1791 = vmatprep.mubr.msk.bf16.mxu0 (!%p1097_p4), %vm2403_vm4, %v2402_v44  ;;  %vm1105_vm5 = vcmask (!%p1097_p4), 130048   ;;  %v2026_v48 = vld [vmem:[#allocation12 + $0x8] sm:$0xff] (!%p1097_p4)   ;;  %v2027_v49 = vld [vmem:[#allocation12 + $0x10] sm:$0xff] (!%p1097_p4)   ;;  %v2028_v50 = vld [vmem:[#allocation12 + $0x18] sm:$0xff] (!%p1097_p4)   ;;  %s3050_s26 = sld [smem:[#allocation36_spill]] (!%p1097_p4) }
 0x650   : > { %1795 = vmatprep.subr.bf16.mxu1 (!%p1097_p4), %v2402_v44  ;;  %1811 = vmatprep.mubr.msk.bf16.mxu1 (!%p1097_p4), %vm2403_vm4, %v2402_v44  ;;  %v2029_v51 = vld [vmem:[#allocation12 + $0x20] sm:$0xff] (!%p1097_p4)   ;;  %v2030_v52 = vld [vmem:[#allocation12 + $0x28] sm:$0xff] (!%p1097_p4)   ;;  %v2031_v53 = vld [vmem:[#allocation12 + $0x30] sm:$0xff] (!%p1097_p4)   ;;  %v1371_v13 = vand.u32 (!%p1097_p4), 127, %v1370_v12 }
 0x651   : > { %1790 = vmatpush3.bf16.msra.mxu0 (!%p1097_p4), %v1103_v45  ;;  %1796 = vmatpush3.bf16.msra.mxu1 (!%p1097_p4), %v2025_v46  ;;  %v2032_v54 = vld [vmem:[#allocation12 + $0x38] sm:$0xff] (!%p1097_p4)   ;;  %v2033_v55 = vld [vmem:[#allocation13] sm:$0xff] (!%p1097_p4)   ;;  %v2034_v56 = vld [vmem:[#allocation13 + $0x8] sm:$0xff] (!%p1097_p4)  }
 0x652   : > { %1797 = vmatprep.subr.bf16.mxu1 (!%p1097_p4), %v2402_v44  ;;  %1815 = vmatprep.subr.bf16.mxu0 (!%p1097_p4), %v2402_v44  ;;  %v2035_v57 = vld [vmem:[#allocation13 + $0x10] sm:$0xff] (!%p1097_p4)   ;;  %v2036_v58 = vld [vmem:[#allocation13 + $0x18] sm:$0xff] (!%p1097_p4)   ;;  %v2037_v59 = vld [vmem:[#allocation13 + $0x20] sm:$0xff] (!%p1097_p4)   ;;  %vm1372_vm6 = vcmp.lt.s32.totalorder (!%p1097_p4), %v1371_v13, 4 }
 0x653   : > { %v2038_v60 = vld [vmem:[#allocation13 + $0x28] sm:$0xff] (!%p1097_p4)   ;;  %v2039_v2 = vld [vmem:[#allocation13 + $0x30] sm:$0xff] (!%p1097_p4)   ;;  %v2040_v3 = vld [vmem:[#allocation13 + $0x38] sm:$0xff] (!%p1097_p4)  }
 0x654   : > { %v1104_v47 = vld [vmem:[%s3049_s5] sm:$0xf] (!%p1097_p4) }
 0x655   : > { %1792 = vmatmul.mubr.msk.bf16.vlgmr.msra.gmra.mrb[0].mxu0 (!%p1097_p4), %vm1105_vm5, %v1104_v47  ;;  %1798 = vmatpush3.bf16.msra.mxu1 (!%p1097_p4), %v2026_v48  ;;  %v1613_v4 = vld [vmem:[%s3050_s26] ss:$0 sm:$0xff] (!%p1097_p4)  ;;  %v1622_v14 = vld [vmem:[%s3050_s26 + $0x1] ss:$0 sm:$0xff] (!%p1097_p4) }
 0x656   : > { %1831 = vmatprep.mubr.msk.bf16.mxu0 %vm2403_vm4, %v2402_v44  ;;  %1799 = vmatprep.subr.bf16.mxu1 %v2402_v44 }
 0x657   : > { %1816 = vmatpush3.bf16.msra.mxu0 %v2033_v55 }
 0x658   : > { %1817 = vmatprep.subr.bf16.mxu0 %v2402_v44 }
 0x659   : > { %1800 = vmatpush3.bf16.msra.mxu1 %v2027_v49 }
 0x65a   : > { %1801 = vmatprep.subr.bf16.mxu1 %v2402_v44 }
 0x65b   : > { %1818 = vmatpush3.bf16.msra.mxu0 %v2034_v56 }
 0x65c   : > { %1819 = vmatprep.subr.bf16.mxu0 %v2402_v44 }
 0x65d   : > { %1802 = vmatpush3.bf16.msra.mxu1 %v2028_v50 }
 0x65e   : > { %1803 = vmatprep.subr.bf16.mxu1 %v2402_v44 }
 0x65f   : > { %1820 = vmatpush3.bf16.msra.mxu0 %v2035_v57 }
 0x660   : > { %1821 = vmatprep.subr.bf16.mxu0 %v2402_v44 }
 0x661   : > { %1804 = vmatpush3.bf16.msra.mxu1 %v2029_v51 }
 0x662   : > { %1805 = vmatprep.subr.bf16.mxu1 %v2402_v44 }
 0x663   : > { %1822 = vmatpush3.bf16.msra.mxu0 %v2036_v58 }
 0x664   : > { %1823 = vmatprep.subr.bf16.mxu0 %v2402_v44 }
 0x665   : > { %1806 = vmatpush3.bf16.msra.mxu1 %v2030_v52 }
 0x666   : > { %1807 = vmatprep.subr.bf16.mxu1 %v2402_v44 }
 0x667   : > { %1824 = vmatpush3.bf16.msra.mxu0 %v2037_v59 }
 0x668   : > { %1825 = vmatprep.subr.bf16.mxu0 %v2402_v44 }
 0x669   : > { %1808 = vmatpush3.bf16.msra.mxu1 %v2031_v53 }
 0x66a   : > { %1809 = vmatprep.subr.bf16.mxu1 %v2402_v44 }
 0x66b   : > { %1826 = vmatpush3.bf16.msra.mxu0 %v2038_v60 }
 0x66c   : > { %1827 = vmatprep.subr.bf16.mxu0 %v2402_v44 }
 0x66d   : > { %1810 = vmatpush3.bf16.msra.mxu1 %v2032_v54 }
 0x66f   : > { %1828 = vmatpush3.bf16.msra.mxu0 %v2039_v2 }
 0x670   : > { %1829 = vmatprep.subr.bf16.mxu0 %v2402_v44 }
 0x673   : > { %1830 = vmatpush3.bf16.msra.mxu0 %v2040_v3 }
 0x728   : > { %v1143_v61 = vpop.f32.mrb[0].mxu0 }
 0x729   : > { %v1149_v62 = vpack.c.bf16 %v1143_v61, %v1143_v61  ;;  %v1793_v63 = vpop.f32.mrb[1].mxu0 }
 0x72a   : > { %v1146_v0 = vpop.f32.mrb[2].mxu0 }
 0x72b   : > { %v1794_v1 = vpop.f32.mrb[3].mxu0  ;;  %1812 = vmatmul.mubr.bf16.vlgmr.msra.gmra.mrb[0].mxu1 %v1149_v62 }
 0x7fe   : > { %v1253_v5 = vpop.f32.mrb[0].mxu1 }
 0x7ff   : > { %v1254_v6 = vadd.f32 %v1613_v4, %v1253_v5  ;;  %v1813_v7 = vpop.f32.mrb[1].mxu1 }
 0x800   : > { %v1256_v8 = vpop.f32.mrb[2].mxu1 }
 0x801   : > { %v1259_v9 = vmax.f32 %v1254_v6, 0.0  ;;  %v1814_v10 = vpop.f32.mrb[3].mxu1 }
 0x803   : > { %v1260_v11 = vpack.c.bf16 %v1259_v9, %v1259_v9 }
 0x805   : > { %1832 = vmatmul.mubr.bf16.vlgmr.msra.gmra.mrb[4].mxu0 %v1260_v11 }
 0x8d8   : > { %v1364_v15 = vpop.f32.mrb[4].mxu0 }
 0x8d9   : > { %v1365_v16 = vadd.f32 %v1622_v14, %v1364_v15  ;;  %v1833_v17 = vpop.f32.mrb[5].mxu0 }
 0x8da   : > { %v1367_v18 = vpop.f32.mrb[6].mxu0 }
 0x8db   : > { %v1834_v19 = vpop.f32.mrb[7].mxu0  ;;  %v1373_v20 = vsel %vm1372_vm6, %v1365_v16, -1e+30 }
 0x8dc   : > { %1374 = vmax.xlane.f32.xlu0 %v1373_v20 }
 0x969   : > { %v1375_v21 = vpop.xlane.xlu0 %1374 }
 0x96a   : > { %v1376_v22 = vsub.f32 %v1373_v20, %v1375_v21 }
 0x96c   : > { %v1377_v23 = vmul.f32 1.442695, %v1376_v22 }
 0x96e   : > { %2041 = vpow2.f32 %v1377_v23 }
 0x978   : > { %v2042_v24 = vpop.eup %2041 }
 0x979   : > { %1379 = vadd.xlane.f32.xlu0 %v2042_v24 }
 0xa06   : > { %v1380_v25 = vpop.xlane.xlu0 %1379 }
 0xa07   : > { %2043 = vlog2.f32 %v1380_v25 }
 0xa11   : > { %v2044_v26 = vpop.eup %2043 }
 0xa12   : > { %v1382_v27 = vmul.f32 0.6931472, %v2044_v26 }
 0xa14   : > { %v1383_v28 = vsub.f32 %v1376_v22, %v1382_v27 }
 0xa16   : > { %1384 = vst [vmem:[#allocation15] sm:$0xff] %v1383_v28 }
 0xa17 PF: > { %p1889_p6 = scmp.eq.s32.totalorder %s2643_s15, 9  ;;  %s2404_s9 = smov [#allocation15]  }
 0xa18   : > { %s1392_s19 = sshll.u32 %s2404_s9, 4  ;;  %s1393_s19 = int_to_ptr.vmem [resolvable:$true] %s1392_s19 }
 0xa19   : > { %s2249_s14 = scalar_lea.vmem %s1393_s19, 128  ;;  %p2256_p9 = scmp.lt.s32.totalorder %s1393_s19, %s1393_s19 }
 0xa1a   : > { %p2250_p1 = scmp.ne.s32.totalorder %s1393_s19, %s2249_s14  ;;  %p2257_p8 = scmp.lt.s32.totalorder %s2249_s14, %s2249_s14 }
 0xa1c   : > { %p2251_p10 = pnand %p2250_p1, %p1889_p6  ;;  %p2258_p2 = por %p2257_p8, %p2256_p9 }
 0xa1e   : > { %p2252_p13 = pneg %p2251_p10 }
 0xa20   : > { %p2259_p7 = pnand %p2258_p2, %p2252_p13 }
 0xa22   : > { %2262 = shalt.err (!%p2259_p7)
}
 0xa23   : > { %s3051_s22 = sld [smem:[#allocation37_spill]] }
 0xa29   : > { %s2263_s28 = scalar_lea.hbm %s3051_s22, 128 }
 0xa2a   : > { %p2264_p12 = scmp.ne.s32.totalorder %s3051_s22, %s2263_s28  ;;  %p2269_p11 = scmp.lt.u32.totalorder %s2263_s28, %s3051_s22 }
 0xa2c   : > { %p2265_p5 = pnand %p2264_p12, %p1889_p6 }
 0xa2e   : > { %p2266_p3 = pneg %p2265_p5 }
 0xa30   : > { %p2271_p0 = pnand %p2269_p11, %p2266_p3 }
 0xa32   : > { %2274 = shalt.err (!%p2271_p0)
}
 0xa33   : > { %1856 = dma.vmem_to_hbm [thread:$0]  (%p1889_p6), %s1393_s19, 128, %s3051_s22, [#allocation6]  }
 0xa34   : > { %2340 = dma.done.wait (%p1889_p6), [#allocation6], 128  }
 0xa35   : > { %2342 = vsyncadd (%p1889_p6), [#allocation6], 4294967168 }
 0xa36 PF: > { %s3052_s23 = sld [smem:[#allocation26_spill]]  ;;  %s3053_s16 = sld [smem:[#allocation30_spill]] }
 0xa37   : > { %s3054_s2 = sld [smem:[#allocation22_spill]]  ;;  %s3055_s14 = sld [smem:[#allocation29_spill]] }
 0xa38   : > { %s3056_s15 = sld [smem:[#allocation25_spill]]  ;;  %s3057_s17 = sld [smem:[#allocation27_spill]] }
 0xa39   : > { %s3058_s20 = sld [smem:[#allocation28_spill]]  ;;  %s3059_s30 = smov %s2349_s10 }
 0xa3a   : > { %s3060_s10 = smov %s2353_s11  ;;  %s3062_s12 = smov %s2361_s13 }
 0xa3c   : > { %s25_s19 = sadd.s32 1, %s3052_s23   ;;  %s3061_s11 = smov %s3053_s16 }
 0xa3d   : > { %p22_p4 = scmp.ge.s32.totalorder %s25_s19, 12   ;;  %s3063_s13 = smov %s3054_s2 }
 0xa3e   : > { %s3064_s16 = smov %s2381_s18 }
 0xa3f   : > { %s3065_s18 = smov %s3058_s20  ;;  %24 = sbr.rel (!%p22_p4) target bundleno = 18 (0x12), region = 156 }
 0xa46   :  { %1405 = vsyncpa [#allocation5], 1 }
 0xa47   :  { %1407 = vsyncpa [#allocation5 + $0x1], 1 }
 0xa48   :  { %1408 = vsyncpa [#allocation8], 1 }
 0xa49   :  { %1409 = vsyncpa [#allocation14], 1 }
 0xa4a   :  { %1410 = vsyncpa [#allocation6], 1 }
 0xa4b   :  { %1412 = vsyncpa [#allocation6 + $0x1], 1 }

</bundles_post_ra>
